<compile_context>
chip_gen: v6e
topology: v6e:2x2x1
jax: 0.10.0
libtpu: 0.0.40
codegen_flags: <defaults>
</compile_context>

<pallas_src>
import functools

import jax
import jax.numpy as jnp
from jax.experimental import pallas as pl
from jax.experimental.pallas import tpu as pltpu


def _round_up(x, m):
    return (x + m - 1) // m * m


def _choose_tile(d_pose, itemsize):
    # 2 pose inputs x 2 pipeline buffers x T x D x itemsize, keep well under
    # the scoped VMEM limit on every generation (v5e 16MiB default, v7x 64MiB phys).
    t = 512
    while t > 128 and 4 * t * d_pose * itemsize > (8 << 20):
        t //= 2
    return t


def _pose_only_kernel(pose_ref, pose_gt_ref, out_ref, *, n_rows, d_pose):
    pid = pl.program_id(0)
    lane = jax.lax.broadcasted_iota(jnp.int32, out_ref.shape, 1)

    @pl.when(pid == 0)
    def _():
        out_ref[...] = jnp.zeros_like(out_ref)

    # SmoothL1 (beta=1.0) partial sum; zero-padded rows contribute exactly 0.
    d = pose_ref[...].astype(jnp.float32) - pose_gt_ref[...].astype(jnp.float32)
    ad = jnp.abs(d)
    sl1 = jnp.where(ad < 1.0, 0.5 * d * d, ad - 0.5)
    out_ref[...] += jnp.where(lane == 0, jnp.sum(sl1, keepdims=True), 0.0)

    @pl.when(pid == pl.num_programs(0) - 1)
    def _():
        out_ref[...] = out_ref[...] * jnp.where(lane == 0, 1.0 / (n_rows * d_pose), 0.0)


def _full_kernel(pose_ref, pose_gt_ref, cp_ref, cp_gt_ref, out_ref,
                 *, n_rows, d_pose, tile):
    pid = pl.program_id(0)
    lane = jax.lax.broadcasted_iota(jnp.int32, out_ref.shape, 1)

    @pl.when(pid == 0)
    def _():
        out_ref[...] = jnp.zeros_like(out_ref)

    # --- SmoothL1 (beta=1.0) partial sum; zero-padded rows contribute 0 ---
    d = pose_ref[...].astype(jnp.float32) - pose_gt_ref[...].astype(jnp.float32)
    ad = jnp.abs(d)
    sl1 = jnp.where(ad < 1.0, 0.5 * d * d, ad - 0.5)
    pose_sum = jnp.sum(sl1, keepdims=True)                      # (1, 1)

    # --- contact path, lane-dense (2, tile); mask padded lanes ---
    row_idx = pid * tile + jax.lax.broadcasted_iota(jnp.int32, (1, tile), 1)
    valid = row_idx < n_rows                                    # (1, tile)

    cp = cp_ref[...].astype(jnp.float32)                        # (2, tile)
    cpg = cp_gt_ref[...].astype(jnp.float32)

    # BCELoss on clamp(1e-4, 1-1e-4); forward divides the mean by 10 (in finalize).
    p = jnp.clip(cp, 0.0001, 1.0 - 0.0001)
    bce = -(cpg * jnp.log(p) + (1.0 - cpg) * jnp.log(1.0 - p))
    bce_sum = jnp.sum(jnp.where(valid, bce, 0.0), keepdims=True)

    # foot_accuracy: both feet correct per row; .int() truncation semantics kept.
    pred = jnp.where(cp >= 0.5, 1, 0)                           # int32 (2, tile)
    tgt = cp_gt_ref[...].astype(jnp.int32)
    eqf = jnp.where(pred == tgt, 1.0, 0.0)                      # (2, tile)
    both = eqf[0:1, :] * eqf[1:2, :]                            # (1, tile), elementwise
    acc_sum = jnp.sum(jnp.where(valid, both, 0.0), keepdims=True)

    out_ref[...] += (jnp.where(lane == 0, pose_sum, 0.0)
                     + jnp.where(lane == 1, bce_sum, 0.0)
                     + jnp.where(lane == 2, acc_sum, 0.0))

    @pl.when(pid == pl.num_programs(0) - 1)
    def _():
        scale = (jnp.where(lane == 0, 1.0 / (n_rows * d_pose), 0.0)
                 + jnp.where(lane == 1, 1.0 / (n_rows * 2 * 10), 0.0)
                 + jnp.where(lane == 2, 100.0 / n_rows, 0.0))
        out_ref[...] = out_ref[...] * scale


def my_loss_1stage_trans(x, y, refine: bool):
    """JAX/Pallas equivalent of MyLoss1StageTrans.forward(x, y, refine)."""
    global_reduced_pose, contact_probability, _velocity, _ = x
    global_reduced_pose_gt, contact_probability_gt, _velocity_gt = y

    D = global_reduced_pose.shape[-1]
    pose = global_reduced_pose.reshape(-1, D)            # native dtype, no astype
    pose_gt = global_reduced_pose_gt.reshape(-1, D)
    N = pose.shape[0]

    T = _choose_tile(D, jnp.dtype(pose.dtype).itemsize)
    N_pad = _round_up(N, T)
    grid = (N_pad // T,)

    if N_pad != N:
        pad = ((0, N_pad - N), (0, 0))
        pose = jnp.pad(pose, pad)
        pose_gt = jnp.pad(pose_gt, pad)

    cparams = pltpu.CompilerParams(
        dimension_semantics=("arbitrary",),       # reduction axis
        vmem_limit_bytes=32 * 1024 * 1024,
    )
    out_shape = jax.ShapeDtypeStruct((1, 128), jnp.float32)
    out_spec = pl.BlockSpec((1, 128), lambda i: (0, 0))
    pose_spec = pl.BlockSpec((T, D), lambda i: (i, 0))

    if refine:
        kernel = functools.partial(_pose_only_kernel, n_rows=N, d_pose=D)
        out = pl.pallas_call(
            kernel,
            grid=grid,
            in_specs=[pose_spec, pose_spec],
            out_specs=out_spec,
            out_shape=out_shape,
            compiler_params=cparams,
        )(pose, pose_gt)
        return {'pose': out[0, 0]}

    # Lane-dense contact layout: (B*S, 2) -> (2, B*S), rows map to lanes.
    cp = contact_probability.reshape(-1, 2).T
    cp_gt = contact_probability_gt.reshape(-1, 2).T
    if N_pad != N:
        padc = ((0, 0), (0, N_pad - N))
        cp = jnp.pad(cp, padc)
        cp_gt = jnp.pad(cp_gt, padc)
    cp_spec = pl.BlockSpec((2, T), lambda i: (0, i))

    kernel = functools.partial(_full_kernel, n_rows=N, d_pose=D, tile=T)
    out = pl.pallas_call(
        kernel,
        grid=grid,
        in_specs=[pose_spec, pose_spec, cp_spec, cp_spec],
        out_specs=out_spec,
        out_shape=out_shape,
        compiler_params=cparams,
    )(pose, pose_gt, cp, cp_gt)

    return {'pose': out[0, 0], 'tranB1': out[0, 1], 'contact_prob': out[0, 2]}


if __name__ == "__main__":
    import numpy as np

    key = jax.random.PRNGKey(0)
    k1, k2, k3, k4, k5 = jax.random.split(key, 5)

    B, S, D = 2, 8, 32  # batch, sequence, reduced-pose dim
    global_reduced_pose = jax.random.normal(k1, (B, S, D), jnp.float32)
    global_reduced_pose_gt = jax.random.normal(k2, (B, S, D), jnp.float32)
    contact_probability = jax.random.uniform(k3, (B, S, 2), jnp.float32)
    contact_probability_gt = (jax.random.uniform(k4, (B, S, 2)) > 0.5).astype(jnp.float32)
    velocity = jax.random.normal(k5, (B, S, 3), jnp.float32)
    velocity_gt = jnp.zeros_like(velocity)
    extra = jnp.zeros((B, S, 1), jnp.float32)

    x = (global_reduced_pose, contact_probability, velocity, extra)
    y = (global_reduced_pose_gt, contact_probability_gt, velocity_gt)

    out = my_loss_1stage_trans(x, y, refine=False)
    out_r = my_loss_1stage_trans(x, y, refine=True)
    jax.block_until_ready((out, out_r))

    # Pure-JAX reference (mirrors the PyTorch module).
    d = global_reduced_pose - global_reduced_pose_gt
    ad = jnp.abs(d)
    pose_ref = jnp.mean(jnp.where(ad < 1.0, 0.5 * d * d, ad - 0.5))
    p = jnp.clip(contact_probability, 0.0001, 1.0 - 0.0001)
    t = contact_probability_gt
    bce_ref = jnp.mean(-(t * jnp.log(p) + (1.0 - t) * jnp.log(1.0 - p))) / 10.0
    pred = (contact_probability >= 0.5).astype(jnp.int32)
    tgt = contact_probability_gt.astype(jnp.int32)
    acc_ref = jnp.mean(
        (jnp.sum((pred == tgt).astype(jnp.int32), axis=-1) == 2).astype(jnp.float32)) * 100.0

    assert np.allclose(np.asarray(out['pose']), np.asarray(pose_ref), rtol=1e-5, atol=1e-6)
    assert np.allclose(np.asarray(out['tranB1']), np.asarray(bce_ref), rtol=1e-5, atol=1e-6)
    assert np.allclose(np.asarray(out['contact_prob']), np.asarray(acc_ref), rtol=1e-5, atol=1e-4)
    assert np.allclose(np.asarray(out_r['pose']), np.asarray(pose_ref), rtol=1e-5, atol=1e-6)

    print("KERNEL_OK")
</pallas_src>

<mosaic_0001>
module attributes {stable_mosaic.version = 11 : i64} {
  func.func @_full_kernel(%arg0: i32, %arg1: memref<512x32xf32, #tpu.memory_space<vmem>>, %arg2: memref<512x32xf32, #tpu.memory_space<vmem>>, %arg3: memref<2x512xf32, #tpu.memory_space<vmem>>, %arg4: memref<2x512xf32, #tpu.memory_space<vmem>>, %arg5: memref<1x128xf32, #tpu.memory_space<vmem>>) attributes {dimension_semantics = [#tpu.dimension_semantics<arbitrary>], iteration_bounds = array<i64: 1>, scalar_prefetch = 0 : i64, scratch_operands = 0 : i64, tpu.core_type = #tpu.core_type<tc>, window_params = [{transform_indices = @transform_0, window_bounds = array<i64: 512, 32>}, {transform_indices = @transform_1, window_bounds = array<i64: 512, 32>}, {transform_indices = @transform_2, window_bounds = array<i64: 2, 512>}, {transform_indices = @transform_3, window_bounds = array<i64: 2, 512>}, {pipeline_mode = #tpu.pipeline_mode<synchronous>, transform_indices = @transform_4, window_bounds = array<i64: 1, 128>}]} {
    %0 = tpu.iota {dimensions = array<i32: 1>} : vector<1x128xi32>
    %c0_i32 = arith.constant 0 : i32
    %1 = arith.cmpi eq, %arg0, %c0_i32 : i32
    %2 = arith.extui %1 : i1 to i32
    %c0_i32_0 = arith.constant 0 : i32
    %3 = arith.cmpi ne, %2, %c0_i32_0 : i32
    scf.if %3 {
      %cst_37 = arith.constant 0.000000e+00 : f32
      %100 = vector.broadcast %cst_37 : f32 to vector<1x128xf32>
      %c0_38 = arith.constant 0 : index
      %c0_39 = arith.constant 0 : index
      %101 = vector.load %arg5[%c0_38, %c0_39] : memref<1x128xf32, #tpu.memory_space<vmem>>, vector<1x128xf32>
      tpu.vector_store %arg5[%c0_38, %c0_39], %100 {strides = array<i32>} : memref<1x128xf32, #tpu.memory_space<vmem>>, vector<1x128xf32>,
    } else {
    }
    %c0 = arith.constant 0 : index
    %c0_1 = arith.constant 0 : index
    %4 = vector.load %arg1[%c0, %c0_1] : memref<512x32xf32, #tpu.memory_space<vmem>>, vector<512x32xf32>
    %c0_2 = arith.constant 0 : index
    %c0_3 = arith.constant 0 : index
    %5 = vector.load %arg2[%c0_2, %c0_3] : memref<512x32xf32, #tpu.memory_space<vmem>>, vector<512x32xf32>
    %6 = arith.subf %4, %5 : vector<512x32xf32>
    %7 = math.absf %6 : vector<512x32xf32>
    %cst = arith.constant 1.000000e+00 : f32
    %8 = vector.broadcast %cst : f32 to vector<512x32xf32>
    %9 = arith.cmpf olt, %7, %8 : vector<512x32xf32>
    %cst_4 = arith.constant 5.000000e-01 : f32
    %10 = vector.broadcast %cst_4 : f32 to vector<512x32xf32>
    %11 = arith.mulf %10, %6 : vector<512x32xf32>
    %12 = arith.mulf %11, %6 : vector<512x32xf32>
    %cst_5 = arith.constant 5.000000e-01 : f32
    %13 = vector.broadcast %cst_5 : f32 to vector<512x32xf32>
    %14 = arith.subf %7, %13 : vector<512x32xf32>
    %15 = arith.select %9, %12, %14 : vector<512x32xi1>, vector<512x32xf32>
    %16 = vector.shape_cast %15 : vector<512x32xf32> to vector<1x512x32xf32>
    %cst_6 = arith.constant dense<0.000000e+00> : vector<1xf32>
    %17 = vector.multi_reduction <add>, %16, %cst_6 [1, 2] : vector<1x512x32xf32> to vector<1xf32>
    %18 = vector.shape_cast %17 : vector<1xf32> to vector<1x1x1xf32>
    %19 = vector.extract %18[0, 0, 0] : f32 from vector<1x1x1xf32>
    %20 = vector.broadcast %19 : f32 to vector<1x1xf32>
    %c512_i32 = arith.constant 512 : i32
    %21 = arith.muli %arg0, %c512_i32 : i32
    %22 = tpu.iota {dimensions = array<i32: 1>} : vector<1x512xi32>
    %23 = vector.broadcast %21 : i32 to vector<1x512xi32>
    %24 = arith.addi %23, %22 : vector<1x512xi32>
    %c16_i32 = arith.constant 16 : i32
    %25 = vector.broadcast %c16_i32 : i32 to vector<1x512xi32>
    %26 = arith.cmpi slt, %24, %25 : vector<1x512xi32>
    %c0_7 = arith.constant 0 : index
    %c0_8 = arith.constant 0 : index
    %27 = vector.load %arg3[%c0_7, %c0_8] : memref<2x512xf32, #tpu.memory_space<vmem>>, vector<2x512xf32>
    %c0_9 = arith.constant 0 : index
    %c0_10 = arith.constant 0 : index
    %28 = vector.load %arg4[%c0_9, %c0_10] : memref<2x512xf32, #tpu.memory_space<vmem>>, vector<2x512xf32>
    %cst_11 = arith.constant 9.99999974E-5 : f32
    %cst_12 = arith.constant 0.999899983 : f32
    %29 = vector.broadcast %cst_11 : f32 to vector<2x512xf32>
    %30 = arith.maximumf %29, %27 : vector<2x512xf32>
    %31 = vector.broadcast %cst_12 : f32 to vector<2x512xf32>
    %32 = arith.minimumf %31, %30 : vector<2x512xf32>
    %33 = math.log %32 : vector<2x512xf32>
    %34 = arith.mulf %28, %33 : vector<2x512xf32>
    %cst_13 = arith.constant 1.000000e+00 : f32
    %35 = vector.broadcast %cst_13 : f32 to vector<2x512xf32>
    %36 = arith.subf %35, %28 : vector<2x512xf32>
    %cst_14 = arith.constant 1.000000e+00 : f32
    %37 = vector.broadcast %cst_14 : f32 to vector<2x512xf32>
    %38 = arith.subf %37, %32 : vector<2x512xf32>
    %39 = math.log %38 : vector<2x512xf32>
    %40 = arith.mulf %36, %39 : vector<2x512xf32>
    %41 = arith.addf %34, %40 : vector<2x512xf32>
    %cst_15 = arith.constant 0.000000e+00 : f32
    %42 = vector.broadcast %cst_15 : f32 to vector<2x512xf32>
    %43 = arith.subf %42, %41 : vector<2x512xf32>
    %cst_16 = arith.constant 0.000000e+00 : f32
    %44 = vector.shape_cast %26 : vector<1x512xi1> to vector<1x512xi1>
    %45 = vector.broadcast %44 : vector<1x512xi1> to vector<2x512xi1>
    %46 = vector.broadcast %cst_16 : f32 to vector<2x512xf32>
    %47 = arith.select %45, %43, %46 : vector<2x512xi1>, vector<2x512xf32>
    %48 = vector.shape_cast %47 : vector<2x512xf32> to vector<1x2x512xf32>
    %cst_17 = arith.constant dense<0.000000e+00> : vector<1xf32>
    %49 = vector.multi_reduction <add>, %48, %cst_17 [1, 2] : vector<1x2x512xf32> to vector<1xf32>
    %50 = vector.shape_cast %49 : vector<1xf32> to vector<1x1x1xf32>
    %51 = vector.extract %50[0, 0, 0] : f32 from vector<1x1x1xf32>
    %52 = vector.broadcast %51 : f32 to vector<1x1xf32>
    %cst_18 = arith.constant 5.000000e-01 : f32
    %53 = vector.broadcast %cst_18 : f32 to vector<2x512xf32>
    %54 = arith.cmpf oge, %27, %53 : vector<2x512xf32>
    %c1_i32 = arith.constant 1 : i32
    %c0_i32_19 = arith.constant 0 : i32
    %55 = vector.broadcast %c1_i32 : i32 to vector<2x512xi32>
    %56 = vector.broadcast %c0_i32_19 : i32 to vector<2x512xi32>
    %57 = arith.select %54, %55, %56 : vector<2x512xi1>, vector<2x512xi32>
    %c0_20 = arith.constant 0 : index
    %c0_21 = arith.constant 0 : index
    %58 = vector.load %arg4[%c0_20, %c0_21] : memref<2x512xf32, #tpu.memory_space<vmem>>, vector<2x512xf32>
    %59 = arith.fptosi %58 : vector<2x512xf32> to vector<2x512xi32>
    %60 = arith.cmpi eq, %57, %59 : vector<2x512xi32>
    %cst_22 = arith.constant 1.000000e+00 : f32
    %cst_23 = arith.constant 0.000000e+00 : f32
    %61 = vector.broadcast %cst_22 : f32 to vector<2x512xf32>
    %62 = vector.broadcast %cst_23 : f32 to vector<2x512xf32>
    %63 = arith.select %60, %61, %62 : vector<2x512xi1>, vector<2x512xf32>
    %64 = vector.extract_strided_slice %63 {offsets = [0, 0], sizes = [1, 512], strides = [1, 1]} : vector<2x512xf32> to vector<1x512xf32>
    %65 = vector.extract_strided_slice %63 {offsets = [1, 0], sizes = [1, 512], strides = [1, 1]} : vector<2x512xf32> to vector<1x512xf32>
    %66 = arith.mulf %64, %65 : vector<1x512xf32>
    %cst_24 = arith.constant 0.000000e+00 : f32
    %67 = vector.broadcast %cst_24 : f32 to vector<1x512xf32>
    %68 = arith.select %26, %66, %67 : vector<1x512xi1>, vector<1x512xf32>
    %69 = vector.shape_cast %68 : vector<1x512xf32> to vector<1x1x512xf32>
    %cst_25 = arith.constant dense<0.000000e+00> : vector<1xf32>
    %70 = vector.multi_reduction <add>, %69, %cst_25 [1, 2] : vector<1x1x512xf32> to vector<1xf32>
    %71 = vector.shape_cast %70 : vector<1xf32> to vector<1x1x1xf32>
    %72 = vector.extract %71[0, 0, 0] : f32 from vector<1x1x1xf32>
    %73 = vector.broadcast %72 : f32 to vector<1x1xf32>
    %c0_26 = arith.constant 0 : index
    %c0_27 = arith.constant 0 : index
    %74 = vector.load %arg5[%c0_26, %c0_27] : memref<1x128xf32, #tpu.memory_space<vmem>>, vector<1x128xf32>
    %c0_i32_28 = arith.constant 0 : i32
    %75 = vector.broadcast %c0_i32_28 : i32 to vector<1x128xi32>
    %76 = arith.cmpi eq, %0, %75 : vector<1x128xi32>
    %cst_29 = arith.constant 0.000000e+00 : f32
    %77 = vector.shape_cast %20 : vector<1x1xf32> to vector<1x1xf32>
    %78 = vector.broadcast %77 : vector<1x1xf32> to vector<1x128xf32>
    %79 = vector.broadcast %cst_29 : f32 to vector<1x128xf32>
    %80 = arith.select %76, %78, %79 : vector<1x128xi1>, vector<1x128xf32>
    %c1_i32_30 = arith.constant 1 : i32
    %81 = vector.broadcast %c1_i32_30 : i32 to vector<1x128xi32>
    %82 = arith.cmpi eq, %0, %81 : vector<1x128xi32>
    %cst_31 = arith.constant 0.000000e+00 : f32
    %83 = vector.shape_cast %52 : vector<1x1xf32> to vector<1x1xf32>
    %84 = vector.broadcast %83 : vector<1x1xf32> to vector<1x128xf32>
    %85 = vector.broadcast %cst_31 : f32 to vector<1x128xf32>
    %86 = arith.select %82, %84, %85 : vector<1x128xi1>, vector<1x128xf32>
    %87 = arith.addf %80, %86 : vector<1x128xf32>
    %c2_i32 = arith.constant 2 : i32
    %88 = vector.broadcast %c2_i32 : i32 to vector<1x128xi32>
    %89 = arith.cmpi eq, %0, %88 : vector<1x128xi32>
    %cst_32 = arith.constant 0.000000e+00 : f32
    %90 = vector.shape_cast %73 : vector<1x1xf32> to vector<1x1xf32>
    %91 = vector.broadcast %90 : vector<1x1xf32> to vector<1x128xf32>
    %92 = vector.broadcast %cst_32 : f32 to vector<1x128xf32>
    %93 = arith.select %89, %91, %92 : vector<1x128xi1>, vector<1x128xf32>
    %94 = arith.addf %87, %93 : vector<1x128xf32>
    %95 = arith.addf %74, %94 : vector<1x128xf32>
    %c0_33 = arith.constant 0 : index
    %c0_34 = arith.constant 0 : index
    %96 = vector.load %arg5[%c0_33, %c0_34] : memref<1x128xf32, #tpu.memory_space<vmem>>, vector<1x128xf32>
    tpu.vector_store %arg5[%c0_33, %c0_34], %95 {strides = array<i32>} : memref<1x128xf32, #tpu.memory_space<vmem>>, vector<1x128xf32>,
    %c0_i32_35 = arith.constant 0 : i32
    %97 = arith.cmpi eq, %arg0, %c0_i32_35 : i32
    %98 = arith.extui %97 : i1 to i32
    %c0_i32_36 = arith.constant 0 : i32
    %99 = arith.cmpi ne, %98, %c0_i32_36 : i32
    scf.if %99 {
      %c0_i32_37 = arith.constant 0 : i32
      %100 = vector.broadcast %c0_i32_37 : i32 to vector<1x128xi32>
      %101 = arith.cmpi eq, %0, %100 : vector<1x128xi32>
      %cst_38 = arith.constant 0.001953125 : f32
      %cst_39 = arith.constant 0.000000e+00 : f32
      %102 = vector.broadcast %cst_38 : f32 to vector<1x128xf32>
      %103 = vector.broadcast %cst_39 : f32 to vector<1x128xf32>
      %104 = arith.select %101, %102, %103 : vector<1x128xi1>, vector<1x128xf32>
      %c1_i32_40 = arith.constant 1 : i32
      %105 = vector.broadcast %c1_i32_40 : i32 to vector<1x128xi32>
      %106 = arith.cmpi eq, %0, %105 : vector<1x128xi32>
      %cst_41 = arith.constant 3.125000e-03 : f32
      %cst_42 = arith.constant 0.000000e+00 : f32
      %107 = vector.broadcast %cst_41 : f32 to vector<1x128xf32>
      %108 = vector.broadcast %cst_42 : f32 to vector<1x128xf32>
      %109 = arith.select %106, %107, %108 : vector<1x128xi1>, vector<1x128xf32>
      %110 = arith.addf %104, %109 : vector<1x128xf32>
      %c2_i32_43 = arith.constant 2 : i32
      %111 = vector.broadcast %c2_i32_43 : i32 to vector<1x128xi32>
      %112 = arith.cmpi eq, %0, %111 : vector<1x128xi32>
      %cst_44 = arith.constant 6.250000e+00 : f32
      %cst_45 = arith.constant 0.000000e+00 : f32
      %113 = vector.broadcast %cst_44 : f32 to vector<1x128xf32>
      %114 = vector.broadcast %cst_45 : f32 to vector<1x128xf32>
      %115 = arith.select %112, %113, %114 : vector<1x128xi1>, vector<1x128xf32>
      %116 = arith.addf %110, %115 : vector<1x128xf32>
      %c0_46 = arith.constant 0 : index
      %c0_47 = arith.constant 0 : index
      %117 = vector.load %arg5[%c0_46, %c0_47] : memref<1x128xf32, #tpu.memory_space<vmem>>, vector<1x128xf32>
      %118 = arith.mulf %117, %116 : vector<1x128xf32>
      %c0_48 = arith.constant 0 : index
      %c0_49 = arith.constant 0 : index
      %119 = vector.load %arg5[%c0_48, %c0_49] : memref<1x128xf32, #tpu.memory_space<vmem>>, vector<1x128xf32>
      tpu.vector_store %arg5[%c0_48, %c0_49], %118 {strides = array<i32>} : memref<1x128xf32, #tpu.memory_space<vmem>>, vector<1x128xf32>,
    } else {
    }
    return
  }
  func.func @transform_0(%arg0: i32) -> (i32, i32) {
    %c0_i32 = arith.constant 0 : i32
    %c0_i32_0 = arith.constant 0 : i32
    return %arg0, %c0_i32 : i32, i32
  }
  func.func @transform_1(%arg0: i32) -> (i32, i32) {
    %c0_i32 = arith.constant 0 : i32
    %c0_i32_0 = arith.constant 0 : i32
    return %arg0, %c0_i32 : i32, i32
  }
  func.func @transform_2(%arg0: i32) -> (i32, i32) {
    %c0_i32 = arith.constant 0 : i32
    %c0_i32_0 = arith.constant 0 : i32
    return %c0_i32, %arg0 : i32, i32
  }
  func.func @transform_3(%arg0: i32) -> (i32, i32) {
    %c0_i32 = arith.constant 0 : i32
    %c0_i32_0 = arith.constant 0 : i32
    return %c0_i32, %arg0 : i32, i32
  }
  func.func @transform_4(%arg0: i32) -> (i32, i32) {
    %c0_i32 = arith.constant 0 : i32
    %c0_i32_0 = arith.constant 0 : i32
    %c0_i32_1 = arith.constant 0 : i32
    return %c0_i32, %c0_i32_0 : i32, i32
  }
}

</mosaic_0001>

<bundles_post_ra>
// kernel: tpu_custom_call.1
= control target key start
LH: loop header
LB: loop body
LE: loop exit
PB: predicated region body
PF: predicated region fallthrough
CT: control target
= control target key end

     0   :  { %9 = vsyncpa [#allocation3], 0  ;;  %vm601_vm0 = vcmask 261120   ;;  %s1013_s14 = smov [#allocation2]   ;;  %s2359_s0 = inlined_call_operand.vmem [shape: f32[512,32], index: 0, kind: input, shape index: {}]   ;;  %s2360_s1 = inlined_call_operand.vmem [shape: f32[512,32], index: 1, kind: input, shape index: {}]   ;;  %s2361_s2 = inlined_call_operand.vmem [shape: f32[2,512], index: 2, kind: input, shape index: {}]   ;;  %s2362_s3 = inlined_call_operand.vmem [shape: f32[2,512], index: 3, kind: input, shape index: {}]   ;;  %s2363_s4 = inlined_call_operand.hbm [shape: f32[1,128], index: 4, kind: output, shape index: {}]  }
   0x1   :  { %v25_v0 = vld [vmem:[%s2359_s0] sm:$0xff]  ;;  %v26_v1 = vld [vmem:[%s2359_s0 + $0x8] sm:$0xff]  ;;  %v27_v2 = vld [vmem:[%s2359_s0 + $0x10] sm:$0xff]  ;;  %s899_s15 = sshll.u32 %s1013_s14, 4  ;;  %s900_s15 = int_to_ptr.vmem [resolvable:$true] %s899_s15 }
   0x2   :  { %v28_v3 = vld [vmem:[%s2359_s0 + $0x18] sm:$0xff]  ;;  %v89_v4 = vld [vmem:[%s2360_s1] sm:$0xff]  ;;  %v30_v6 = vld [vmem:[%s2359_s0 + $0x28] sm:$0xff]  ;;  %s988_s16 = scalar_lea.vmem %s900_s15, 16  ;;  %s992_s17 = scalar_lea.vmem %s900_s15, 32 }
   0x3   :  { %v29_v5 = vld [vmem:[%s2359_s0 + $0x20] sm:$0xff]  ;;  %v31_v7 = vld [vmem:[%s2359_s0 + $0x30] sm:$0xff]  ;;  %v32_v8 = vld [vmem:[%s2359_s0 + $0x38] sm:$0xff]  ;;  %v1105_v22 = vsub.f32 %v25_v0, %v89_v4  ;;  %p989_p0 = scmp.ne.s32.totalorder %s900_s15, %s988_s16  ;;  %p993_p1 = scmp.lt.s32.totalorder %s900_s15, %s900_s15 }
   0x4   :  { %v90_v9 = vld [vmem:[%s2360_s1 + $0x8] sm:$0xff]  ;;  %v33_v10 = vld [vmem:[%s2359_s0 + $0x40] sm:$0xff]  ;;  %v35_v12 = vld [vmem:[%s2359_s0 + $0x50] sm:$0xff]  ;;  %p994_p2 = scmp.lt.s32.totalorder %s992_s17, %s988_s16 }
   0x5   :  { %v34_v11 = vld [vmem:[%s2359_s0 + $0x48] sm:$0xff]  ;;  %v91_v13 = vld [vmem:[%s2360_s1 + $0x10] sm:$0xff]  ;;  %v92_v14 = vld [vmem:[%s2360_s1 + $0x18] sm:$0xff]  ;;  %v1125_v29 = vsub.f32 %v26_v1, %v90_v9 }
   0x6   :  { %v93_v15 = vld [vmem:[%s2360_s1 + $0x20] sm:$0xff]  ;;  %v36_v16 = vld [vmem:[%s2359_s0 + $0x58] sm:$0xff]  ;;  %v38_v18 = vld [vmem:[%s2359_s0 + $0x68] sm:$0xff]  ;;  %v1145_v36 = vsub.f32 %v27_v2, %v91_v13  ;;  %v1147_v37 = vsub.f32 %v28_v3, %v92_v14  ;;  %p995_p3 = por %p994_p2, %p993_p1 }
   0x7   :  { %v37_v17 = vld [vmem:[%s2359_s0 + $0x60] sm:$0xff]  ;;  %v94_v19 = vld [vmem:[%s2360_s1 + $0x28] sm:$0xff]  ;;  %v95_v20 = vld [vmem:[%s2360_s1 + $0x30] sm:$0xff]  ;;  %v1167_v44 = vsub.f32 %v29_v5, %v93_v15 }
   0x8   :  { %v96_v21 = vld [vmem:[%s2360_s1 + $0x38] sm:$0xff]  ;;  %v39_v23 = vld [vmem:[%s2359_s0 + $0x70] sm:$0xff]  ;;  %v41_v25 = vld [vmem:[%s2359_s0 + $0x80] sm:$0xff]  ;;  %v1169_v45 = vsub.f32 %v30_v6, %v94_v19  ;;  %v1171_v46 = vsub.f32 %v31_v7, %v95_v20  ;;  %p996_p4 = pnand %p995_p3, %p989_p0 }
   0x9   :  { %v40_v24 = vld [vmem:[%s2359_s0 + $0x78] sm:$0xff]  ;;  %v97_v26 = vld [vmem:[%s2360_s1 + $0x40] sm:$0xff]  ;;  %v98_v27 = vld [vmem:[%s2360_s1 + $0x48] sm:$0xff]  ;;  %v1173_v47 = vsub.f32 %v32_v8, %v96_v21 }
   0xa   :  { %v99_v28 = vld [vmem:[%s2360_s1 + $0x50] sm:$0xff]  ;;  %v42_v30 = vld [vmem:[%s2359_s0 + $0x88] sm:$0xff]  ;;  %v44_v32 = vld [vmem:[%s2359_s0 + $0x98] sm:$0xff]  ;;  %2396 = vst [vmem:[#allocation5_spill] sm:$0xff] %v1169_v45  ;;  %v1193_v54 = vsub.f32 %v33_v10, %v97_v26  ;;  %v1195_v55 = vsub.f32 %v34_v11, %v98_v27 }
   0xb   :  { %v43_v31 = vld [vmem:[%s2359_s0 + $0x90] sm:$0xff]  ;;  %v100_v33 = vld [vmem:[%s2360_s1 + $0x58] sm:$0xff]  ;;  %v101_v34 = vld [vmem:[%s2360_s1 + $0x60] sm:$0xff]  ;;  %2397 = vst [vmem:[#allocation6_spill] sm:$0xff] %v1171_v46  ;;  %v1197_v56 = vsub.f32 %v35_v12, %v99_v28 }
   0xc   :  { %v102_v35 = vld [vmem:[%s2360_s1 + $0x68] sm:$0xff]  ;;  %v45_v38 = vld [vmem:[%s2359_s0 + $0xa0] sm:$0xff]  ;;  %v47_v40 = vld [vmem:[%s2359_s0 + $0xb0] sm:$0xff]  ;;  %2398 = vst [vmem:[#allocation7_spill] sm:$0xff] %v1173_v47  ;;  %v1218_v0 = vsub.f32 %v36_v16, %v100_v33  ;;  %v1220_v1 = vsub.f32 %v37_v17, %v101_v34 }
   0xd   :  { %v46_v39 = vld [vmem:[%s2359_s0 + $0xa8] sm:$0xff]  ;;  %v103_v41 = vld [vmem:[%s2360_s1 + $0x70] sm:$0xff]  ;;  %v104_v42 = vld [vmem:[%s2360_s1 + $0x78] sm:$0xff]  ;;  %2399 = vst [vmem:[#allocation8_spill] sm:$0xff] %v1193_v54  ;;  %v1222_v2 = vsub.f32 %v38_v18, %v102_v35 }
   0xe   :  { %v105_v43 = vld [vmem:[%s2360_s1 + $0x80] sm:$0xff]  ;;  %v48_v48 = vld [vmem:[%s2359_s0 + $0xb8] sm:$0xff]  ;;  %v50_v50 = vld [vmem:[%s2359_s0 + $0xc8] sm:$0xff]  ;;  %v1243_v10 = vsub.f32 %v39_v23, %v103_v41  ;;  %v1245_v11 = vsub.f32 %v40_v24, %v104_v42 }
   0xf   :  { %v49_v49 = vld [vmem:[%s2359_s0 + $0xc0] sm:$0xff]  ;;  %v106_v51 = vld [vmem:[%s2360_s1 + $0x88] sm:$0xff]  ;;  %v107_v52 = vld [vmem:[%s2360_s1 + $0x90] sm:$0xff]  ;;  %v1247_v12 = vsub.f32 %v41_v25, %v105_v43 }
  0x10   :  { %v108_v53 = vld [vmem:[%s2360_s1 + $0x98] sm:$0xff]  ;;  %v51_v58 = vld [vmem:[%s2359_s0 + $0xd0] sm:$0xff]  ;;  %v53_v60 = vld [vmem:[%s2359_s0 + $0xe0] sm:$0xff]  ;;  %v1268_v20 = vsub.f32 %v42_v30, %v106_v51  ;;  %v1270_v21 = vsub.f32 %v43_v31, %v107_v52 }
  0x11   :  { %v52_v59 = vld [vmem:[%s2359_s0 + $0xd8] sm:$0xff]  ;;  %v109_v61 = vld [vmem:[%s2360_s1 + $0xa0] sm:$0xff]  ;;  %v110_v62 = vld [vmem:[%s2360_s1 + $0xa8] sm:$0xff]  ;;  %v1272_v23 = vsub.f32 %v44_v32, %v108_v53 }
  0x12   :  { %v111_v63 = vld [vmem:[%s2360_s1 + $0xb0] sm:$0xff]  ;;  %v54_v4 = vld [vmem:[%s2359_s0 + $0xe8] sm:$0xff]  ;;  %v56_v6 = vld [vmem:[%s2359_s0 + $0xf8] sm:$0xff]  ;;  %v1293_v32 = vsub.f32 %v45_v38, %v109_v61  ;;  %v1295_v33 = vsub.f32 %v46_v39, %v110_v62 }
  0x13   :  { %v55_v5 = vld [vmem:[%s2359_s0 + $0xf0] sm:$0xff]  ;;  %v112_v7 = vld [vmem:[%s2360_s1 + $0xb8] sm:$0xff]  ;;  %v113_v8 = vld [vmem:[%s2360_s1 + $0xc0] sm:$0xff]  ;;  %v1297_v34 = vsub.f32 %v47_v40, %v111_v63 }
  0x14   :  { %v114_v9 = vld [vmem:[%s2360_s1 + $0xc8] sm:$0xff]  ;;  %v57_v14 = vld [vmem:[%s2359_s0 + $0x100] sm:$0xff]  ;;  %v59_v16 = vld [vmem:[%s2359_s0 + $0x110] sm:$0xff]  ;;  %v1318_v51 = vsub.f32 %v48_v48, %v112_v7  ;;  %v1320_v52 = vsub.f32 %v49_v49, %v113_v8 }
  0x15   :  { %v58_v15 = vld [vmem:[%s2359_s0 + $0x108] sm:$0xff]  ;;  %v115_v17 = vld [vmem:[%s2360_s1 + $0xd0] sm:$0xff]  ;;  %v116_v18 = vld [vmem:[%s2360_s1 + $0xd8] sm:$0xff]  ;;  %v1322_v53 = vsub.f32 %v50_v50, %v114_v9 }
  0x16   :  { %v117_v19 = vld [vmem:[%s2360_s1 + $0xe0] sm:$0xff]  ;;  %v60_v25 = vld [vmem:[%s2359_s0 + $0x118] sm:$0xff]  ;;  %v62_v27 = vld [vmem:[%s2359_s0 + $0x128] sm:$0xff]  ;;  %v1343_v7 = vsub.f32 %v51_v58, %v115_v17  ;;  %v1345_v8 = vsub.f32 %v52_v59, %v116_v18 }
  0x17   :  { %v61_v26 = vld [vmem:[%s2359_s0 + $0x120] sm:$0xff]  ;;  %v118_v28 = vld [vmem:[%s2360_s1 + $0xe8] sm:$0xff]  ;;  %v119_v30 = vld [vmem:[%s2360_s1 + $0xf0] sm:$0xff]  ;;  %v1347_v9 = vsub.f32 %v53_v60, %v117_v19 }
  0x18   :  { %v120_v31 = vld [vmem:[%s2360_s1 + $0xf8] sm:$0xff]  ;;  %v63_v41 = vld [vmem:[%s2359_s0 + $0x130] sm:$0xff]  ;;  %v65_v43 = vld [vmem:[%s2359_s0 + $0x140] sm:$0xff]  ;;  %v1368_v17 = vsub.f32 %v54_v4, %v118_v28  ;;  %v1370_v18 = vsub.f32 %v55_v5, %v119_v30 }
  0x19   :  { %v64_v42 = vld [vmem:[%s2359_s0 + $0x138] sm:$0xff]  ;;  %v121_v38 = vld [vmem:[%s2360_s1 + $0x100] sm:$0xff]  ;;  %v122_v39 = vld [vmem:[%s2360_s1 + $0x108] sm:$0xff]  ;;  %v1372_v19 = vsub.f32 %v56_v6, %v120_v31 }
  0x1a   :  { %v123_v40 = vld [vmem:[%s2360_s1 + $0x110] sm:$0xff]  ;;  %v66_v62 = vld [vmem:[%s2359_s0 + $0x148] sm:$0xff]  ;;  %v68_v35 = vld [vmem:[%s2359_s0 + $0x158] sm:$0xff]  ;;  %2400 = vst [vmem:[#allocation9_spill] sm:$0xff] %v1370_v18  ;;  %v1393_v28 = vsub.f32 %v57_v14, %v121_v38  ;;  %v1395_v30 = vsub.f32 %v58_v15, %v122_v39 }
  0x1b   :  { %v67_v63 = vld [vmem:[%s2359_s0 + $0x150] sm:$0xff]  ;;  %v124_v48 = vld [vmem:[%s2360_s1 + $0x118] sm:$0xff]  ;;  %v125_v49 = vld [vmem:[%s2360_s1 + $0x120] sm:$0xff]  ;;  %2401 = vst [vmem:[#allocation10_spill] sm:$0xff] %v1372_v19  ;;  %v1397_v31 = vsub.f32 %v59_v16, %v123_v40 }
  0x1c   :  { %v126_v50 = vld [vmem:[%s2360_s1 + $0x128] sm:$0xff]  ;;  %v69_v24 = vld [vmem:[%s2359_s0 + $0x160] sm:$0xff]  ;;  %v71_v3 = vld [vmem:[%s2359_s0 + $0x170] sm:$0xff]  ;;  %2402 = vst [vmem:[#allocation11_spill] sm:$0xff] %v1395_v30  ;;  %v1418_v38 = vsub.f32 %v60_v25, %v124_v48  ;;  %v1420_v39 = vsub.f32 %v61_v26, %v125_v49 }
  0x1d   :  { %v70_v13 = vld [vmem:[%s2359_s0 + $0x168] sm:$0xff]  ;;  %v127_v58 = vld [vmem:[%s2360_s1 + $0x130] sm:$0xff]  ;;  %v128_v59 = vld [vmem:[%s2360_s1 + $0x138] sm:$0xff]  ;;  %2403 = vst [vmem:[#allocation12_spill] sm:$0xff] %v1397_v31  ;;  %v1422_v40 = vsub.f32 %v62_v27, %v126_v50 }
  0x1e   :  { %v129_v60 = vld [vmem:[%s2360_s1 + $0x140] sm:$0xff]  ;;  %v72_v57 = vld [vmem:[%s2359_s0 + $0x178] sm:$0xff]  ;;  %v74_v45 = vld [vmem:[%s2359_s0 + $0x188] sm:$0xff]  ;;  %2404 = vst [vmem:[#allocation13_spill] sm:$0xff] %v1418_v38  ;;  %v1443_v48 = vsub.f32 %v63_v41, %v127_v58  ;;  %v1445_v49 = vsub.f32 %v64_v42, %v128_v59 }
  0x1f   :  { %v73_v46 = vld [vmem:[%s2359_s0 + $0x180] sm:$0xff]  ;;  %v130_v4 = vld [vmem:[%s2360_s1 + $0x148] sm:$0xff]  ;;  %v131_v5 = vld [vmem:[%s2360_s1 + $0x150] sm:$0xff]  ;;  %2405 = vst [vmem:[#allocation14_spill] sm:$0xff] %v1420_v39  ;;  %v1447_v50 = vsub.f32 %v65_v43, %v129_v60 }
  0x20   :  { %v132_v6 = vld [vmem:[%s2360_s1 + $0x158] sm:$0xff]  ;;  %v75_v47 = vld [vmem:[%s2359_s0 + $0x190] sm:$0xff]  ;;  %v77_v18 = vld [vmem:[%s2359_s0 + $0x1a0] sm:$0xff]  ;;  %2406 = vst [vmem:[#allocation15_spill] sm:$0xff] %v1422_v40  ;;  %v1468_v58 = vsub.f32 %v66_v62, %v130_v4  ;;  %v1470_v59 = vsub.f32 %v67_v63, %v131_v5 }
  0x21   :  { %v76_v19 = vld [vmem:[%s2359_s0 + $0x198] sm:$0xff]  ;;  %v133_v14 = vld [vmem:[%s2360_s1 + $0x160] sm:$0xff]  ;;  %v134_v15 = vld [vmem:[%s2360_s1 + $0x168] sm:$0xff]  ;;  %2407 = vst [vmem:[#allocation16_spill] sm:$0xff] %v1443_v48  ;;  %v1472_v60 = vsub.f32 %v68_v35, %v132_v6 }
  0x22   :  { %v135_v16 = vld [vmem:[%s2360_s1 + $0x170] sm:$0xff]  ;;  %v78_v31 = vld [vmem:[%s2359_s0 + $0x1a8] sm:$0xff]  ;;  %v80_v54 = vld [vmem:[%s2359_s0 + $0x1b8] sm:$0xff]  ;;  %2408 = vst [vmem:[#allocation17_spill] sm:$0xff] %v1445_v49  ;;  %v1487_v35 = vsub.f32 %v69_v24, %v133_v14  ;;  %v1489_v63 = vsub.f32 %v70_v13, %v134_v15 }
  0x23   :  { %v79_v30 = vld [vmem:[%s2359_s0 + $0x1b0] sm:$0xff]  ;;  %v136_v25 = vld [vmem:[%s2360_s1 + $0x178] sm:$0xff]  ;;  %v137_v26 = vld [vmem:[%s2360_s1 + $0x180] sm:$0xff]  ;;  %2409 = vst [vmem:[#allocation18_spill] sm:$0xff] %v1447_v50  ;;  %v1491_v4 = vsub.f32 %v71_v3, %v135_v16 }
  0x24   :  { %v138_v27 = vld [vmem:[%s2360_s1 + $0x188] sm:$0xff]  ;;  %v81_v40 = vld [vmem:[%s2359_s0 + $0x1c0] sm:$0xff]  ;;  %v83_v38 = vld [vmem:[%s2359_s0 + $0x1d0] sm:$0xff]  ;;  %2410 = vst [vmem:[#allocation19_spill] sm:$0xff] %v1472_v60  ;;  %v1503_v24 = vsub.f32 %v72_v57, %v136_v25  ;;  %v1505_v13 = vsub.f32 %v73_v46, %v137_v26 }
  0x25   :  { %v82_v39 = vld [vmem:[%s2359_s0 + $0x1c8] sm:$0xff]  ;;  %v139_v41 = vld [vmem:[%s2360_s1 + $0x190] sm:$0xff]  ;;  %v140_v42 = vld [vmem:[%s2360_s1 + $0x198] sm:$0xff]  ;;  %v1507_v3 = vsub.f32 %v74_v45, %v138_v27 }
  0x26   :  { %v141_v43 = vld [vmem:[%s2360_s1 + $0x1a0] sm:$0xff]  ;;  %v84_v50 = vld [vmem:[%s2359_s0 + $0x1d8] sm:$0xff]  ;;  %v142_v49 = vld [vmem:[%s2360_s1 + $0x1a8] sm:$0xff]  ;;  %2411 = vst [vmem:[#allocation20_spill] sm:$0xff] %v1505_v13  ;;  %v1519_v57 = vsub.f32 %v75_v47, %v139_v41  ;;  %v1521_v46 = vsub.f32 %v76_v19, %v140_v42 }
  0x27   :  { %v143_v48 = vld [vmem:[%s2360_s1 + $0x1b0] sm:$0xff]  ;;  %v144_v62 = vld [vmem:[%s2360_s1 + $0x1b8] sm:$0xff]  ;;  %v145_v6 = vld [vmem:[%s2360_s1 + $0x1c0] sm:$0xff]  ;;  %2412 = vst [vmem:[#allocation21_spill] sm:$0xff] %v1507_v3  ;;  %v1523_v45 = vsub.f32 %v77_v18, %v141_v43  ;;  %v1529_v27 = vsub.f32 %v78_v31, %v142_v49 }
  0x28   :  { %v146_v61 = vld [vmem:[%s2360_s1 + $0x1c8] sm:$0xff]  ;;  %v147_v60 = vld [vmem:[%s2360_s1 + $0x1d0] sm:$0xff]  ;;  %v85_v15 = vld [vmem:[%s2359_s0 + $0x1e0] sm:$0xff]  ;;  %v1531_v14 = vsub.f32 %v79_v30, %v143_v48  ;;  %v1533_v3 = vsub.f32 %v80_v54, %v144_v62  ;;  %v1545_v31 = vsub.f32 %v81_v40, %v145_v6  ;;  %v346_v62 = vmul.f32 0.5, %v1125_v29 }
  0x29   :  { %v148_v16 = vld [vmem:[%s2360_s1 + $0x1d8] sm:$0xff]  ;;  %v149_v5 = vld [vmem:[%s2360_s1 + $0x1e0] sm:$0xff]  ;;  %v86_v26 = vld [vmem:[%s2359_s0 + $0x1e8] sm:$0xff]  ;;  %2413 = vst [vmem:[#allocation22_spill] sm:$0xff] %v1529_v27  ;;  %v1547_v30 = vsub.f32 %v82_v39, %v146_v61  ;;  %v1549_v54 = vsub.f32 %v83_v38, %v147_v60  ;;  %v345_v60 = vmul.f32 0.5, %v1105_v22  ;;  %v348_v48 = vmul.f32 0.5, %v1147_v37 }
  0x2a   :  { %2414 = vst [vmem:[#allocation23_spill] sm:$0xff] %v1531_v14  ;;  %2415 = vst [vmem:[#allocation24_spill] sm:$0xff] %v1533_v3  ;;  %v87_v47 = vld [vmem:[%s2359_s0 + $0x1f0] sm:$0xff]  ;;  %v88_v18 = vld [vmem:[%s2359_s0 + $0x1f8] sm:$0xff]  ;;  %v1558_v42 = vsub.f32 %v84_v50, %v148_v16  ;;  %v1560_v43 = vsub.f32 %v85_v15, %v149_v5  ;;  %v347_v5 = vmul.f32 0.5, %v1145_v36  ;;  %v349_v40 = vmul.f32 0.5, %v1167_v44 }
  0x2b   :  { %v150_v19 = vld [vmem:[%s2360_s1 + $0x1e8] sm:$0xff]  ;;  %2416 = vst [vmem:[#allocation25_spill] sm:$0xff] %v1545_v31  ;;  %2417 = vst [vmem:[#allocation26_spill] sm:$0xff] %v1547_v30  ;;  %v151_v49 = vld [vmem:[%s2360_s1 + $0x1f0] sm:$0xff]  ;;  %v2424_v39 = vand.u32 2147483647, %v1105_v22 }
  0x2c   :  { %2418 = vst [vmem:[#allocation27_spill] sm:$0xff] %v1549_v54  ;;  %v152_v41 = vld [vmem:[%s2360_s1 + $0x1f8] sm:$0xff]  ;;  %2419 = vst [vmem:[#allocation28_spill] sm:$0xff] %v1558_v42  ;;  %v1568_v6 = vsub.f32 %v86_v26, %v150_v19  ;;  %v1573_v15 = vsub.f32 %v87_v47, %v151_v49  ;;  %v409_v47 = vmul.f32 %v345_v60, %v1105_v22  ;;  %v2426_v19 = vand.u32 2147483647, %v1145_v36  ;;  %v2437_v13 = vld [vmem:[#allocation5_spill] sm:$0xff] }
  0x2d   :  { %2420 = vst [vmem:[#allocation29_spill] sm:$0xff] %v1560_v43  ;;  %v1578_v61 = vsub.f32 %v88_v18, %v152_v41  ;;  %v410_v49 = vmul.f32 %v346_v62, %v1125_v29  ;;  %v411_v38 = vmul.f32 %v347_v5, %v1145_v36  ;;  %v907_v18 = vadd.f32 -0.5, %v2424_v39  ;;  %v2443_v36 = vld [vmem:[#allocation6_spill] sm:$0xff]  ;;  %v2456_v62 = vld [vmem:[#allocation8_spill] sm:$0xff] }
  0x2e   :  { %2421 = vst [vmem:[#allocation30_spill] sm:$0xff] %v1568_v6  ;;  %2422 = vst [vmem:[#allocation31_spill] sm:$0xff] %v1573_v15  ;;  %v2425_v41 = vand.u32 2147483647, %v1125_v29  ;;  %v909_v16 = vadd.f32 -0.5, %v2426_v19  ;;  %v2427_v50 = vmov %v2424_v39  ;;  %v2433_v39 = vmov %v2426_v19  ;;  %v2436_v19 = vld [vmem:[#allocation9_spill] sm:$0xff] }
  0x2f   :  { %2423 = vst [vmem:[#allocation32_spill] sm:$0xff] %v1578_v61  ;;  %vm1597_vm1 = vcmp.lt.f32.partialorder %v2427_v50, 1.0  ;;  %vm1609_vm3 = vcmp.lt.f32.partialorder %v2433_v39, 1.0  ;;  %v350_v22 = vmul.f32 0.5, %v2437_v13  ;;  %v412_v50 = vmul.f32 %v348_v48, %v1147_v37  ;;  %v2439_v29 = vld [vmem:[#allocation10_spill] sm:$0xff] }
  0x30   :  { %v908_v26 = vadd.f32 -0.5, %v2425_v41  ;;  %v2430_v60 = vmov %v2425_v41  ;;  %v2438_v61 = vand.u32 2147483647, %v1147_v37  ;;  %v351_v39 = vmul.f32 0.5, %v2443_v36 }
  0x31   :  { %vm1603_vm2 = vcmp.lt.f32.partialorder %v2430_v60, 1.0  ;;  %v413_v42 = vmul.f32 %v349_v40, %v1167_v44  ;;  %v2444_v41 = vand.u32 2147483647, %v1167_v44  ;;  %v537_v48 = vsel %vm1597_vm1, %v409_v47, %v907_v18 }
  0x32   :  { %v910_v15 = vadd.f32 -0.5, %v2438_v61  ;;  %v2440_v6 = vmov %v2438_v61  ;;  %v538_v61 = vsel %vm1603_vm2, %v410_v49, %v908_v26  ;;  %v539_v37 = vsel %vm1609_vm3, %v411_v38, %v909_v16  ;;  %v2454_v38 = vld [vmem:[#allocation7_spill] sm:$0xff] }
  0x33   :  { %vm1621_vm4 = vcmp.lt.f32.partialorder %v2440_v6, 1.0  ;;  %v911_v54 = vadd.f32 -0.5, %v2444_v41  ;;  %v2445_v60 = vmov %v2444_v41  ;;  %v2448_v40 = vand.u32 2147483647, %v2437_v13 }
  0x34   :  { %vm1638_vm5 = vcmp.lt.f32.partialorder %v2445_v60, 1.0  ;;  %v2451_v25 = vand.u32 2147483647, %v2443_v36  ;;  %v352_v16 = vmul.f32 0.5, %v2454_v38  ;;  %v414_v44 = vmul.f32 %v350_v22, %v2437_v13 }
  0x35   :  { %vm1644_vm6 = vcmp.lt.f32.partialorder %v2448_v40, 1.0  ;;  %v2455_v47 = vmov %v2448_v40  ;;  %v540_v18 = vsel %vm1621_vm4, %v412_v50, %v910_v15  ;;  %v353_v5 = vmul.f32 0.5, %v2456_v62 }
  0x36   :  { %vm1650_vm7 = vcmp.lt.f32.partialorder %v2451_v25, 1.0  ;;  %v912_v49 = vadd.f32 -0.5, %v2455_v47  ;;  %v602_v60 = vsel %vm601_vm0, %v537_v48, 0.0  ;;  %v603_v40 = vsel %vm601_vm0, %v538_v61, 0.0 }
  0x37   :  { %v605_v25 = vsel %vm601_vm0, %v539_v37, 0.0  ;;  %v415_v6 = vmul.f32 %v351_v39, %v2443_v36  ;;  %v2457_v31 = vand.u32 2147483647, %v2443_v36  ;;  %v541_v13 = vsel %vm1638_vm5, %v413_v42, %v911_v54 }
  0x38   :  { %v604_v22 = vadd.f32 %v603_v40, %v602_v60  ;;  %v2458_v43 = vand.u32 2147483647, %v2454_v38  ;;  %v2461_v50 = vand.u32 2147483647, %v2456_v62  ;;  %v354_v39 = vmul.f32 0.5, %v1195_v55 }
  0x39   :  { %v913_v3 = vadd.f32 -0.5, %v2457_v31  ;;  %v607_v31 = vsel %vm601_vm0, %v540_v18, 0.0  ;;  %v416_v30 = vmul.f32 %v352_v16, %v2454_v38  ;;  %v542_v36 = vsel %vm1644_vm6, %v414_v44, %v912_v49 }
  0x3a   :  { %vm1671_vm8 = vcmp.lt.f32.partialorder %v2458_v43, 1.0  ;;  %vm1677_vm9 = vcmp.lt.f32.partialorder %v2461_v50, 1.0  ;;  %v2464_v54 = vmov %v2458_v43  ;;  %v606_v61 = vadd.f32 %v605_v25, %v604_v22  ;;  %v751_v43 = vld [vmem:[%s2361_s2] sm:$0xff] }
  0x3b   :  { %v914_v42 = vadd.f32 -0.5, %v2464_v54  ;;  %v2465_v37 = vand.u32 2147483647, %v1195_v55  ;;  %v2468_v60 = vand.u32 2147483647, %v1197_v56  ;;  %v355_v16 = vmul.f32 0.5, %v1197_v56 }
  0x3c   :  { %v609_v38 = vsel %vm601_vm0, %v541_v13, 0.0  ;;  %v417_v41 = vmul.f32 %v353_v5, %v2456_v62  ;;  %v2471_v44 = vmov %v2461_v50  ;;  %v543_v18 = vsel %vm1650_vm7, %v415_v6, %v913_v3 }
  0x3d   :  { %vm1690_vm10 = vcmp.lt.f32.partialorder %v2465_v37, 1.0  ;;  %vm1696_vm11 = vcmp.lt.f32.partialorder %v2468_v60, 1.0  ;;  %v915_v49 = vadd.f32 -0.5, %v2471_v44  ;;  %v608_v25 = vadd.f32 %v607_v31, %v606_v61 }
  0x3e   :  { %v2472_v22 = vand.u32 2147483647, %v1218_v0  ;;  %v2475_v50 = vand.u32 2147483647, %v1220_v1  ;;  %v356_v5 = vmul.f32 0.5, %v1218_v0  ;;  %v611_v62 = vsel %vm601_vm0, %v542_v36, 0.0 }
  0x3f   :  { %v418_v26 = vmul.f32 %v354_v39, %v1195_v55  ;;  %v2478_v3 = vmov %v2465_v37  ;;  %v544_v13 = vsel %vm1671_vm8, %v416_v30, %v914_v42  ;;  %v610_v31 = vadd.f32 %v609_v38, %v608_v25 }
  0x40   :  { %vm1709_vm12 = vcmp.lt.f32.partialorder %v2472_v22, 1.0  ;;  %vm1715_vm13 = vcmp.lt.f32.partialorder %v2475_v50, 1.0  ;;  %v916_v6 = vadd.f32 -0.5, %v2478_v3  ;;  %v2479_v61 = vand.u32 2147483647, %v1222_v2 }
  0x41   :  { %v357_v60 = vmul.f32 0.5, %v1220_v1  ;;  %v358_v44 = vmul.f32 0.5, %v1222_v2  ;;  %v613_v36 = vsel %vm601_vm0, %v543_v18, 0.0  ;;  %v419_v39 = vmul.f32 %v355_v16, %v1197_v56 }
  0x42   :  { %vm1728_vm14 = vcmp.lt.f32.partialorder %v2479_v61, 1.0  ;;  %v2482_v55 = vand.u32 2147483647, %v1197_v56  ;;  %v545_v15 = vsel %vm1677_vm9, %v417_v41, %v915_v49  ;;  %v612_v30 = vadd.f32 %v611_v62, %v610_v31 }
  0x43   :  { %v2483_v42 = vand.u32 2147483647, %v1243_v10  ;;  %v359_v25 = vmul.f32 0.5, %v1243_v10  ;;  %v360_v50 = vmul.f32 0.5, %v1245_v11  ;;  %v361_v18 = vmul.f32 0.5, %v1247_v12 }
  0x44   :  { %v917_v22 = vadd.f32 -0.5, %v2482_v55  ;;  %v615_v16 = vsel %vm601_vm0, %v544_v13, 0.0  ;;  %v420_v56 = vmul.f32 %v356_v5, %v1218_v0  ;;  %v2486_v48 = vand.u32 2147483647, %v1218_v0 }
  0x45   :  { %vm1742_vm15 = vcmp.lt.f32.partialorder %v2483_v42, 1.0  ;;  %v546_v49 = vsel %vm1690_vm10, %v418_v26, %v916_v6  ;;  %v614_v62 = vadd.f32 %v613_v36, %v612_v30  ;;  %v2487_v3 = vand.u32 2147483647, %v1245_v11 }
  0x46   :  { %v918_v41 = vadd.f32 -0.5, %v2486_v48  ;;  %v362_v61 = vmul.f32 0.5, %v1268_v20  ;;  %v363_v55 = vmul.f32 0.5, %v1270_v21  ;;  %v1764_v13 = vmul.f32 0.5, %v1272_v23 }
  0x47   :  { %vm1757_vm1 = vcmp.lt.f32.partialorder %v2487_v3, 1.0  ;;  %v617_v0 = vsel %vm601_vm0, %v545_v15, 0.0  ;;  %v2490_v5 = vand.u32 2147483647, %v1247_v12  ;;  %v421_v26 = vmul.f32 %v357_v60, %v1220_v1 }
  0x48   :  { %v2493_v6 = vand.u32 2147483647, %v1220_v1  ;;  %v547_v30 = vsel %vm1696_vm11, %v419_v39, %v917_v22  ;;  %v616_v42 = vadd.f32 %v615_v16, %v614_v62  ;;  %v1779_v48 = vmul.f32 0.5, %v1293_v32 }
  0x49   :  { %vm1769_vm2 = vcmp.lt.f32.partialorder %v2490_v5, 1.0  ;;  %v422_v15 = vmul.f32 %v358_v44, %v1222_v2  ;;  %v2494_v3 = vand.u32 2147483647, %v1222_v2  ;;  %v619_v14 = vsel %vm601_vm0, %v546_v49, 0.0 }
  0x4a   :  { %v919_v36 = vadd.f32 -0.5, %v2493_v6  ;;  %v1786_v27 = vmul.f32 0.5, %v1295_v33  ;;  %v423_v1 = vmul.f32 %v359_v25, %v1243_v10  ;;  %v548_v40 = vsel %vm1709_vm12, %v420_v56, %v918_v41 }
  0x4b   :  { %v920_v5 = vadd.f32 -0.5, %v2494_v3  ;;  %v618_v60 = vadd.f32 %v617_v0, %v616_v42  ;;  %v2495_v39 = vand.u32 2147483647, %v1268_v20  ;;  %v424_v2 = vmul.f32 %v360_v50, %v1245_v11 }
  0x4c   :  { %v425_v44 = vmul.f32 %v361_v18, %v1247_v12  ;;  %v1800_v16 = vmul.f32 %v362_v61, %v1268_v20  ;;  %v621_v49 = vsel %vm601_vm0, %v547_v30, 0.0  ;;  %v2498_v25 = vand.u32 2147483647, %v1243_v10  ;;  %v1815_v18 = vld [vmem:[%s2362_s3] sm:$0xff] }
  0x4d   :  { %vm1793_vm3 = vcmp.lt.f32.partialorder %v2495_v39, 1.0  ;;  %v2499_v41 = vand.u32 2147483647, %v1245_v11  ;;  %v549_v50 = vsel %vm1715_vm13, %v421_v26, %v919_v36  ;;  %v620_v0 = vadd.f32 %v619_v14, %v618_v60 }
  0x4e   :  { %v921_v56 = vadd.f32 -0.5, %v2498_v25  ;;  %v2500_v61 = vand.u32 2147483647, %v1270_v21  ;;  %v550_v10 = vsel %vm1728_vm14, %v422_v15, %v920_v5  ;;  %v623_v11 = vsel %vm601_vm0, %v548_v40, 0.0 }
  0x4f   :  { %v922_v62 = vadd.f32 -0.5, %v2499_v41  ;;  %v18_v30 = vlaneseq  ;;  %v622_v54 = vadd.f32 %v621_v49, %v620_v0  ;;  %v753_v26 = vmax.f32 %v751_v43, 0.0001 }
  0x50   :  { %vm1819_vm4 = vcmp.lt.f32.partialorder %v2500_v61, 1.0  ;;  %vm816_vm5 = vcmp.ge.f32.partialorder %v751_v43, 0.5  ;;  %v1010_v14 = vmov 0.0   ;;  %v2503_v36 = vand.u32 2147483647, %v1272_v23 }
  0x51   :  { %24 = vst [vmem:[#allocation2] sm:$0x1] %v1010_v14  ;;  %v427_v3 = vmul.f32 %v363_v55, %v1270_v21  ;;  %v2506_v37 = vand.u32 2147483647, %v1247_v12  ;;  %v625_v5 = vsel %vm601_vm0, %v549_v50, 0.0  ;;  %v976_v40 = vtrunc.f32 %v1815_v18 }
  0x52   :  { %vm1829_vm6 = vcmp.lt.f32.partialorder %v2503_v36, 1.0  ;;  %v551_v60 = vsel %vm1742_vm15, %v423_v1, %v921_v56  ;;  %v624_v39 = vadd.f32 %v623_v11, %v622_v54  ;;  %v754_v49 = vmin.f32 %v753_v26, 0.9999 }
  0x53   :  { %v923_v15 = vadd.f32 -0.5, %v2506_v37  ;;  %v1011_v43 = vmov 0   ;;  %v2507_v41 = vand.u32 2147483647, %v1293_v32  ;;  %v2510_v12 = vand.u32 2147483647, %v1268_v20 }
  0x54   :  { %v817_v25 = vsel %vm816_vm5, 1, %v1011_v43  ;;  %v627_v50 = vsel %vm601_vm0, %v550_v10, 0.0  ;;  %v1849_v61 = vshrl.u32 %v18_v30, 7  ;;  %v977_v36 = vcvt.f32.s32 %v976_v40 }
  0x55   :  { %vm1842_vm7 = vcmp.lt.f32.partialorder %v2507_v41, 1.0  ;;  %v924_v55 = vadd.f32 -0.5, %v2510_v12  ;;  %v552_v38 = vsel %vm1757_vm1, %v424_v2, %v922_v62  ;;  %v626_v1 = vadd.f32 %v625_v5, %v624_v39 }
  0x56   :  { %984 = vlog2.f32 %v754_v49  ;;  %v759_v56 = vsub.f32 1.0, %v754_v49  ;;  %v2511_v11 = vand.u32 2147483647, %v1295_v33  ;;  %v2514_v20 = vand.u32 2147483647, %v1270_v21 }
  0x57   :  { %v553_v10 = vsel %vm1769_vm2, %v425_v44, %v923_v15  ;;  %v629_v37 = vsel %vm601_vm0, %v551_v60, 0.0  ;;  %vm819_vm9 = vcmp.eq.s32.totalorder %v817_v25, %v977_v36  ;;  %v628_v31 = vadd.f32 %v627_v50, %v626_v1 }
  0x58   :  { %vm1855_vm8 = vcmp.lt.f32.partialorder %v2511_v11, 1.0  ;;  %v925_v26 = vadd.f32 -0.5, %v2514_v20  ;;  %v1864_v2 = vand.u32 127, %v18_v30  ;;  %v820_v62 = vsel %vm819_vm9, 1.0, %v1010_v14 }
  0x59   :  { %986 = vlog2.f32 %v759_v56  ;;  %v2515_v5 = vand.u32 2147483647, %v1297_v34  ;;  %v367_v21 = vmul.f32 0.5, %v1297_v34  ;;  %v631_v47 = vsel %vm601_vm0, %v552_v38, 0.0 }
  0x5a   :  { %v971_v44 = vrot.slane %v820_v62, 9  ;;  %v829_v15 = vsub.s32 0, %v1849_v61  ;;  %v2518_v60 = vand.u32 2147483647, %v1318_v51  ;;  %v428_v39 = vmul.f32 %v1764_v13, %v1272_v23 }
  0x5b   :  { %vm1869_vm10 = vcmp.lt.f32.partialorder %v2515_v5, 1.0  ;;  %v2521_v49 = vand.u32 2147483647, %v1272_v23  ;;  %v554_v25 = vsel %vm1793_vm3, %v1800_v16, %v924_v55  ;;  %v630_v41 = vadd.f32 %v629_v37, %v628_v31 }
  0x5c   :  { %vm1878_vm11 = vcmp.lt.f32.partialorder %v2518_v60, 1.0  ;;  %v368_v12 = vmul.f32 0.5, %v1318_v51  ;;  %v429_v50 = vmul.f32 %v1779_v48, %v1293_v32  ;;  %v633_v36 = vsel %vm601_vm0, %v553_v10, 0.0 }
  0x5d   :  { %v926_v43 = vadd.f32 -0.5, %v2521_v49  ;;  %v825_v38 = vmul.f32 %v971_v44, %v820_v62  ;;  %v2522_v1 = vand.u32 2147483647, %v1293_v32  ;;  %v555_v23 = vsel %vm1819_vm4, %v427_v3, %v925_v26 }
  0x5e   :  { %v632_v13 = vadd.f32 %v631_v47, %v630_v41  ;;  %vm747_vm12 = vcmp.lt.s32.totalorder %v1864_v2, 16  ;;  %v2523_v22 = vand.u32 2147483647, %v1320_v52  ;;  %v369_v48 = vmul.f32 0.5, %v1320_v52 }
  0x5f   :  { %v927_v56 = vadd.f32 -0.5, %v2522_v1  ;;  %v635_v55 = vsel %vm601_vm0, %v554_v25, 0.0  ;;  %v830_v11 = vrot.slane %v825_v38, %v829_v15  ;;  %vm851_vm14 = vcmask 1040384  }
  0x60   :  { %vm1900_vm13 = vcmp.lt.f32.partialorder %v2523_v22, 1.0  ;;  %v430_v32 = vmul.f32 %v1786_v27, %v1295_v33  ;;  %v2526_v6 = vand.u32 2147483647, %v1295_v33  ;;  %v556_v20 = vsel %vm1829_vm6, %v428_v39, %v926_v43 }
  0x61   :  { %v634_v26 = vadd.f32 %v633_v36, %v632_v13  ;;  %v2527_v10 = vand.u32 2147483647, %v1322_v53  ;;  %v431_v31 = vmul.f32 %v367_v21, %v1297_v34  ;;  %v637_v62 = vsel %vm601_vm0, %v555_v23, 0.0 }
  0x62   :  { %v928_v3 = vadd.f32 -0.5, %v2526_v6  ;;  %v847_v27 = vsel %vm747_vm12, %v830_v11, 0.0  ;;  %v2530_v33 = vmov %v2515_v5  ;;  %v557_v42 = vsel %vm1842_vm7, %v429_v50, %v927_v56 }
  0x63   :  { %vm1914_vm15 = vcmp.lt.f32.partialorder %v2527_v10, 1.0  ;;  %v929_v5 = vadd.f32 -0.5, %v2530_v33  ;;  %v636_v47 = vadd.f32 %v635_v55, %v634_v26  ;;  %v852_v44 = vsel %vm851_vm14, %v847_v27, 0.0  ;;  %v985_v50 = vpop.eup %984 }
  0x64   :  { %v370_v15 = vmul.f32 0.5, %v1322_v53  ;;  %v432_v60 = vmul.f32 %v368_v12, %v1318_v51  ;;  %v2531_v39 = vand.u32 2147483647, %v1318_v51  ;;  %v639_v49 = vsel %vm601_vm0, %v556_v20, 0.0  ;;  %859 = vadd.xlane.f32.xlu1 %v852_v44 }
  0x65   :  { %v371_v43 = vmul.f32 0.5, %v1343_v7  ;;  %v558_v34 = vsel %vm1855_vm8, %v430_v32, %v928_v3  ;;  %v638_v25 = vadd.f32 %v637_v62, %v636_v47  ;;  %v1012_v0 = vmov 1983009808  }
  0x66   :  { %v930_v21 = vadd.f32 -0.5, %v2531_v39  ;;  %v776_v41 = vunpack.c.l.s4 %v1012_v0  ;;  %v372_v36 = vmul.f32 0.5, %v1345_v8  ;;  %v433_v38 = vmul.f32 %v369_v48, %v1320_v52 }
  0x67   :  { %v2532_v12 = vmov %v2523_v22  ;;  %v641_v1 = vsel %vm601_vm0, %v557_v42, 0.0  ;;  %v559_v56 = vsel %vm1869_vm10, %v431_v31, %v929_v5  ;;  %v640_v23 = vadd.f32 %v639_v49, %v638_v25  ;;  %v987_v22 = vpop.eup %986 }
  0x68   :  { %v931_v51 = vadd.f32 -0.5, %v2532_v12  ;;  %v756_v13 = vmul.f32 0.6931472, %v985_v50  ;;  %v758_v54 = vsub.f32 1.0, %v1815_v18  ;;  %v434_v55 = vmul.f32 %v370_v15, %v1322_v53 }
  0x69   :  { %v2533_v11 = vmov %v2527_v10  ;;  %v560_v48 = vsel %vm1878_vm11, %v432_v60, %v930_v21  ;;  %v643_v52 = vsel %vm601_vm0, %v558_v34, 0.0  ;;  %v642_v6 = vadd.f32 %v641_v1, %v640_v23 }
  0x6a   :  { %v932_v32 = vadd.f32 -0.5, %v2533_v11  ;;  %v757_v3 = vmul.f32 %v756_v13, %v1815_v18  ;;  %v761_v40 = vmul.f32 0.6931472, %v987_v22  ;;  %v777_v20 = vunpack.c.0.s8 %v776_v41 }
  0x6b   :  { %v2534_v26 = vand.u32 2147483647, %v1343_v7  ;;  %v373_v31 = vmul.f32 0.5, %v1347_v9  ;;  %v435_v53 = vmul.f32 %v371_v43, %v1343_v7  ;;  %v645_v30 = vsel %vm601_vm0, %v559_v56, 0.0  ;;  %v2561_v43 = vld [vmem:[#allocation13_spill] sm:$0xff] }
  0x6c   :  { %v561_v18 = vsel %vm1900_vm13, %v433_v38, %v931_v51  ;;  %v644_v33 = vadd.f32 %v643_v52, %v642_v6  ;;  %v762_v5 = vmul.f32 %v761_v40, %v758_v54  ;;  %v374_v42 = vmul.f32 0.5, %v1368_v17 }
  0x6d   :  { %vm1951_vm1 = vcmp.lt.f32.partialorder %v2534_v26, 1.0  ;;  %v2537_v62 = vmov %v2534_v26  ;;  %v436_v47 = vmul.f32 %v372_v36, %v1345_v8  ;;  %v2538_v44 = vand.u32 2147483647, %v1345_v8 }
  0x6e   :  { %v933_v27 = vadd.f32 -0.5, %v2537_v62  ;;  %v647_v60 = vsel %vm601_vm0, %v560_v48, 0.0  ;;  %v562_v39 = vsel %vm1914_vm15, %v434_v55, %v932_v32  ;;  %v646_v21 = vadd.f32 %v645_v30, %v644_v33 }
  0x6f   :  { %v934_v15 = vadd.f32 -0.5, %v2538_v44  ;;  %v763_v7 = vadd.f32 %v762_v5, %v757_v3  ;;  %v780_v49 = vsub.s32 %v777_v20, %v1849_v61  ;;  %v2539_v16 = vmov %v2538_v44  ;;  %v2551_v20 = vld [vmem:[#allocation11_spill] sm:$0xff] }
  0x70   :  { %vm1972_vm2 = vcmp.lt.f32.partialorder %v2539_v16, 1.0  ;;  %v375_v34 = vmul.f32 0.5, %v2436_v19  ;;  %v437_v25 = vmul.f32 %v373_v31, %v1347_v9  ;;  %v649_v0 = vsel %vm601_vm0, %v561_v18, 0.0 }
  0x71   :  { %v2542_v41 = vand.u32 2147483647, %v1347_v9  ;;  %v563_v50 = vsel %vm1951_vm1, %v435_v53, %v933_v27  ;;  %v648_v36 = vadd.f32 %v647_v60, %v646_v21  ;;  %v764_v61 = vsub.f32 0.0, %v763_v7 }
  0x72   :  { %v376_v12 = vmul.f32 0.5, %v2439_v29  ;;  %v438_v51 = vmul.f32 %v374_v42, %v1368_v17  ;;  %v651_v1 = vsel %vm601_vm0, %v562_v39, 0.0  ;;  %v2546_v56 = vand.u32 2147483647, %v1368_v17  ;;  %v2556_v42 = vld [vmem:[#allocation12_spill] sm:$0xff] }
  0x73   :  { %v935_v37 = vadd.f32 -0.5, %v2542_v41  ;;  %v2543_v8 = vmov %v2542_v41  ;;  %v564_v13 = vsel %vm1972_vm2, %v436_v47, %v934_v15  ;;  %v650_v54 = vadd.f32 %v649_v0, %v648_v36 }
  0x74   :  { %vm1985_vm3 = vcmp.lt.f32.partialorder %v2543_v8, 1.0  ;;  %v936_v23 = vadd.f32 -0.5, %v2546_v56  ;;  %v781_v22 = vrot.slane %v764_v61, %v780_v49  ;;  %v2547_v9 = vmov %v2546_v56  ;;  %v2565_v8 = vld [vmem:[#allocation14_spill] sm:$0xff] }
  0x75   :  { %vm1998_vm4 = vcmp.lt.f32.partialorder %v2547_v9, 1.0  ;;  %v377_v11 = vmul.f32 0.5, %v1393_v28  ;;  %v439_v32 = vmul.f32 %v375_v34, %v2436_v19  ;;  %v653_v48 = vsel %vm601_vm0, %v563_v50, 0.0 }
  0x76   :  { %v2550_v52 = vand.u32 2147483647, %v2436_v19  ;;  %v565_v3 = vsel %vm1985_vm3, %v437_v25, %v935_v37  ;;  %v652_v40 = vadd.f32 %v651_v1, %v650_v54  ;;  %v2011_v17 = vsel %vm747_vm12, %v781_v22, 0.0  ;;  %v2568_v54 = vld [vmem:[#allocation15_spill] sm:$0xff] }
  0x77   :  { %v250_v26 = vand.u32 2147483647, %v2551_v20  ;;  %v378_v53 = vmul.f32 0.5, %v2551_v20  ;;  %v655_v30 = vsel %vm601_vm0, %v564_v13, 0.0  ;;  %v440_v62 = vmul.f32 %v376_v12, %v2439_v29 }
  0x78   :  { %v937_v6 = vadd.f32 -0.5, %v2550_v52  ;;  %v2552_v10 = vmov %v2550_v52  ;;  %v2555_v27 = vand.u32 2147483647, %v2439_v29  ;;  %v566_v33 = vsel %vm1998_vm4, %v438_v51, %v936_v23 }
  0x79   :  { %vm2016_vm5 = vcmp.lt.f32.partialorder %v2552_v10, 1.0  ;;  %v654_v5 = vadd.f32 %v653_v48, %v652_v40  ;;  %v251_v47 = vand.u32 2147483647, %v2556_v42  ;;  %v379_v15 = vmul.f32 0.5, %v2556_v42 }
  0x7a   :  { %v938_v18 = vadd.f32 -0.5, %v2555_v27  ;;  %v2557_v19 = vmov %v2555_v27  ;;  %v657_v60 = vsel %vm601_vm0, %v565_v3, 0.0  ;;  %v441_v39 = vmul.f32 %v377_v11, %v1393_v28  ;;  %v2571_v3 = vld [vmem:[#allocation16_spill] sm:$0xff]  ;;  %v2574_v27 = vld [vmem:[#allocation17_spill] sm:$0xff] }
  0x7b   :  { %vm2030_vm6 = vcmp.lt.f32.partialorder %v2557_v19, 1.0  ;;  %v2560_v21 = vand.u32 2147483647, %v1393_v28  ;;  %v567_v49 = vsel %vm2016_vm5, %v439_v32, %v937_v6  ;;  %v656_v16 = vadd.f32 %v655_v30, %v654_v5 }
  0x7c   :  { %v252_v34 = vand.u32 2147483647, %v2561_v43  ;;  %v380_v0 = vmul.f32 0.5, %v2561_v43  ;;  %v659_v41 = vsel %vm601_vm0, %v566_v33, 0.0  ;;  %v442_v37 = vmul.f32 %v378_v53, %v2551_v20 }
  0x7d   :  { %v939_v7 = vadd.f32 -0.5, %v2560_v21  ;;  %v2562_v29 = vmov %v2560_v21  ;;  %v940_v50 = vadd.f32 -0.5, %v250_v26  ;;  %v568_v36 = vsel %vm2030_vm6, %v440_v62, %v938_v18 }
  0x7e   :  { %vm2044_vm7 = vcmp.lt.f32.partialorder %v2562_v29, 1.0  ;;  %v658_v61 = vadd.f32 %v657_v60, %v656_v16  ;;  %v253_v38 = vand.u32 2147483647, %v2565_v8  ;;  %vm2054_vm8 = vcmp.lt.f32.partialorder %v250_v26, 1.0  ;;  %v2577_v60 = vld [vmem:[#allocation18_spill] sm:$0xff] }
  0x7f   :  { %v381_v28 = vmul.f32 0.5, %v2565_v8  ;;  %v661_v51 = vsel %vm601_vm0, %v567_v49, 0.0  ;;  %v443_v1 = vmul.f32 %v379_v15, %v2556_v42  ;;  %v941_v56 = vadd.f32 -0.5, %v251_v47 }
  0x80   :  { %v569_v23 = vsel %vm2044_vm7, %v441_v39, %v939_v7  ;;  %v660_v13 = vadd.f32 %v659_v41, %v658_v61  ;;  %v254_v22 = vand.u32 2147483647, %v2568_v54  ;;  %vm2064_vm9 = vcmp.lt.f32.partialorder %v251_v47, 1.0 }
  0x81   :  { %v382_v55 = vmul.f32 0.5, %v2568_v54  ;;  %v663_v11 = vsel %vm601_vm0, %v568_v36, 0.0  ;;  %v444_v32 = vmul.f32 %v380_v0, %v2561_v43  ;;  %v942_v48 = vadd.f32 -0.5, %v252_v34 }
  0x82   :  { %v570_v52 = vsel %vm2054_vm8, %v442_v37, %v940_v50  ;;  %v662_v6 = vadd.f32 %v661_v51, %v660_v13  ;;  %v255_v40 = vand.u32 2147483647, %v2571_v3  ;;  %vm2074_vm10 = vcmp.lt.f32.partialorder %v252_v34, 1.0 }
  0x83   :  { %v383_v26 = vmul.f32 0.5, %v2571_v3  ;;  %v665_v10 = vsel %vm601_vm0, %v569_v23, 0.0  ;;  %v445_v31 = vmul.f32 %v381_v28, %v2565_v8  ;;  %v943_v53 = vadd.f32 -0.5, %v253_v38 }
  0x84   :  { %v571_v30 = vsel %vm2064_vm9, %v443_v1, %v941_v56  ;;  %v664_v62 = vadd.f32 %v663_v11, %v662_v6  ;;  %v256_v18 = vand.u32 2147483647, %v2574_v27  ;;  %vm2084_vm11 = vcmp.lt.f32.partialorder %v253_v38, 1.0 }
  0x85   :  { %v384_v5 = vmul.f32 0.5, %v2574_v27  ;;  %v667_v42 = vsel %vm601_vm0, %v570_v52, 0.0  ;;  %v446_v47 = vmul.f32 %v382_v55, %v2568_v54  ;;  %v944_v19 = vadd.f32 -0.5, %v254_v22  ;;  %v2584_v54 = vld [vmem:[#allocation19_spill] sm:$0xff] }
  0x86   :  { %v572_v44 = vsel %vm2074_vm10, %v444_v32, %v942_v48  ;;  %v666_v15 = vadd.f32 %v665_v10, %v664_v62  ;;  %v257_v39 = vand.u32 2147483647, %v2577_v60  ;;  %vm2094_vm12 = vcmp.lt.f32.partialorder %v254_v22, 1.0  ;;  %v2625_v62 = vld [vmem:[#allocation28_spill] sm:$0xff] }
  0x87   :  { %v385_v7 = vmul.f32 0.5, %v2577_v60  ;;  %v669_v49 = vsel %vm601_vm0, %v571_v30, 0.0  ;;  %v447_v16 = vmul.f32 %v383_v26, %v2571_v3  ;;  %v945_v43 = vadd.f32 -0.5, %v255_v40 }
  0x88   :  { %v573_v34 = vsel %vm2084_vm11, %v445_v31, %v943_v53  ;;  %v668_v29 = vadd.f32 %v667_v42, %v666_v15  ;;  %v258_v25 = vand.u32 2147483647, %v1468_v58  ;;  %vm2104_vm13 = vcmp.lt.f32.partialorder %v255_v40, 1.0 }
  0x89   :  { %v386_v41 = vmul.f32 0.5, %v1468_v58  ;;  %v671_v37 = vsel %vm601_vm0, %v572_v44, 0.0  ;;  %v448_v50 = vmul.f32 %v384_v5, %v2574_v27  ;;  %v946_v36 = vadd.f32 -0.5, %v256_v18 }
  0x8a   :  { %v574_v61 = vsel %vm2094_vm12, %v446_v47, %v944_v19  ;;  %v670_v8 = vadd.f32 %v669_v49, %v668_v29  ;;  %v259_v38 = vand.u32 2147483647, %v1470_v59  ;;  %vm2114_vm14 = vcmp.lt.f32.partialorder %v256_v18, 1.0 }
  0x8b   :  { %v387_v28 = vmul.f32 0.5, %v1470_v59  ;;  %v673_v51 = vsel %vm601_vm0, %v573_v34, 0.0  ;;  %v449_v1 = vmul.f32 %v385_v7, %v2577_v60  ;;  %v947_v56 = vadd.f32 -0.5, %v257_v39 }
  0x8c   :  { %v575_v23 = vsel %vm2104_vm13, %v447_v16, %v945_v43  ;;  %v672_v13 = vadd.f32 %v671_v37, %v670_v8  ;;  %v260_v22 = vand.u32 2147483647, %v2584_v54  ;;  %vm2124_vm15 = vcmp.lt.f32.partialorder %v257_v39, 1.0 }
  0x8d   :  { %v388_v55 = vmul.f32 0.5, %v2584_v54  ;;  %v675_v11 = vsel %vm601_vm0, %v574_v61, 0.0  ;;  %v450_v32 = vmul.f32 %v386_v41, %v1468_v58  ;;  %v948_v48 = vadd.f32 -0.5, %v258_v25  ;;  %v2595_v41 = vld [vmem:[#allocation20_spill] sm:$0xff] }
  0x8e   :  { %v576_v52 = vsel %vm2114_vm14, %v448_v50, %v946_v36  ;;  %v674_v6 = vadd.f32 %v673_v51, %v672_v13  ;;  %v261_v3 = vand.u32 2147483647, %v1487_v35  ;;  %vm2134_vm1 = vcmp.lt.f32.partialorder %v258_v25, 1.0  ;;  %v2634_v50 = vld [vmem:[#allocation31_spill] sm:$0xff] }
  0x8f   :  { %v389_v20 = vmul.f32 0.5, %v1487_v35  ;;  %v677_v26 = vsel %vm601_vm0, %v575_v23, 0.0  ;;  %v451_v10 = vmul.f32 %v387_v28, %v1470_v59  ;;  %v949_v31 = vadd.f32 -0.5, %v259_v38  ;;  %v2598_v28 = vld [vmem:[#allocation21_spill] sm:$0xff] }
  0x90   :  { %v577_v58 = vsel %vm2124_vm15, %v449_v1, %v947_v56  ;;  %v676_v53 = vadd.f32 %v675_v11, %v674_v6  ;;  %v262_v30 = vand.u32 2147483647, %v1489_v63  ;;  %vm2144_vm2 = vcmp.lt.f32.partialorder %v259_v38, 1.0 }
  0x91   :  { %v390_v27 = vmul.f32 0.5, %v1489_v63  ;;  %v679_v18 = vsel %vm601_vm0, %v576_v52, 0.0  ;;  %v452_v33 = vmul.f32 %v388_v55, %v2584_v54  ;;  %v950_v5 = vadd.f32 -0.5, %v260_v22 }
  0x92   :  { %v578_v59 = vsel %vm2134_vm1, %v450_v32, %v948_v48  ;;  %v678_v42 = vadd.f32 %v677_v26, %v676_v53  ;;  %v263_v47 = vand.u32 2147483647, %v1491_v4  ;;  %vm2154_vm3 = vcmp.lt.f32.partialorder %v260_v22, 1.0 }
  0x93   :  { %v391_v44 = vmul.f32 0.5, %v1491_v4  ;;  %v681_v15 = vsel %vm601_vm0, %v577_v58, 0.0  ;;  %v453_v60 = vmul.f32 %v389_v20, %v1487_v35  ;;  %v951_v39 = vadd.f32 -0.5, %v261_v3 }
  0x94   :  { %v579_v21 = vsel %vm2144_vm2, %v451_v10, %v949_v31  ;;  %v680_v7 = vadd.f32 %v679_v18, %v678_v42  ;;  %v264_v49 = vand.u32 2147483647, %v1503_v24  ;;  %vm2164_vm4 = vcmp.lt.f32.partialorder %v261_v3, 1.0 }
  0x95   :  { %v392_v43 = vmul.f32 0.5, %v1503_v24  ;;  %v683_v34 = vsel %vm601_vm0, %v578_v59, 0.0  ;;  %v454_v29 = vmul.f32 %v390_v27, %v1489_v63  ;;  %v952_v25 = vadd.f32 -0.5, %v262_v30 }
  0x96   :  { %v580_v35 = vsel %vm2154_vm3, %v452_v33, %v950_v5  ;;  %v682_v0 = vadd.f32 %v681_v15, %v680_v7  ;;  %v265_v37 = vand.u32 2147483647, %v2595_v41  ;;  %vm2174_vm5 = vcmp.lt.f32.partialorder %v262_v30, 1.0 }
  0x97   :  { %v393_v36 = vmul.f32 0.5, %v2595_v41  ;;  %v685_v61 = vsel %vm601_vm0, %v579_v21, 0.0  ;;  %v455_v8 = vmul.f32 %v391_v44, %v1491_v4  ;;  %v953_v38 = vadd.f32 -0.5, %v263_v47  ;;  %v2628_v44 = vld [vmem:[#allocation29_spill] sm:$0xff] }
  0x98   :  { %v581_v63 = vsel %vm2164_vm4, %v453_v60, %v951_v39  ;;  %v684_v12 = vadd.f32 %v683_v34, %v682_v0  ;;  %v266_v51 = vand.u32 2147483647, %v2598_v28  ;;  %vm2184_vm6 = vcmp.lt.f32.partialorder %v263_v47, 1.0  ;;  %v2607_v47 = vld [vmem:[#allocation22_spill] sm:$0xff] }
  0x99   :  { %v394_v56 = vmul.f32 0.5, %v2598_v28  ;;  %v687_v23 = vsel %vm601_vm0, %v580_v35, 0.0  ;;  %v456_v13 = vmul.f32 %v392_v43, %v1503_v24  ;;  %v954_v54 = vadd.f32 -0.5, %v264_v49  ;;  %v2631_v43 = vld [vmem:[#allocation30_spill] sm:$0xff] }
  0x9a   :  { %v582_v4 = vsel %vm2174_vm5, %v454_v29, %v952_v25  ;;  %v686_v22 = vadd.f32 %v685_v61, %v684_v12  ;;  %v267_v9 = vand.u32 2147483647, %v1519_v57  ;;  %vm2194_vm7 = vcmp.lt.f32.partialorder %v264_v49, 1.0  ;;  %v2610_v49 = vld [vmem:[#allocation23_spill] sm:$0xff]  ;;  %v2616_v12 = vld [vmem:[#allocation25_spill] sm:$0xff] }
  0x9b   :  { %v395_v11 = vmul.f32 0.5, %v1519_v57  ;;  %v689_v32 = vsel %vm601_vm0, %v581_v63, 0.0  ;;  %v457_v48 = vmul.f32 %v393_v36, %v2595_v41  ;;  %v955_v52 = vadd.f32 -0.5, %v265_v37  ;;  %v2613_v41 = vld [vmem:[#allocation24_spill] sm:$0xff] }
  0x9c   :  { %v583_v24 = vsel %vm2184_vm6, %v455_v8, %v953_v38  ;;  %v688_v6 = vadd.f32 %v687_v23, %v686_v22  ;;  %v268_v3 = vand.u32 2147483647, %v1521_v46  ;;  %vm2204_vm8 = vcmp.lt.f32.partialorder %v265_v37, 1.0  ;;  %v2619_v22 = vld [vmem:[#allocation26_spill] sm:$0xff] }
  0x9d   :  { %v396_v20 = vmul.f32 0.5, %v1521_v46  ;;  %v691_v26 = vsel %vm601_vm0, %v582_v4, 0.0  ;;  %v458_v10 = vmul.f32 %v394_v56, %v2598_v28  ;;  %v956_v31 = vadd.f32 -0.5, %v266_v51 }
  0x9e   :  { %v584_v58 = vsel %vm2194_vm7, %v456_v13, %v954_v54  ;;  %v690_v53 = vadd.f32 %v689_v32, %v688_v6  ;;  %v269_v30 = vand.u32 2147483647, %v1523_v45  ;;  %vm2214_vm9 = vcmp.lt.f32.partialorder %v266_v51, 1.0  ;;  %v2637_v51 = vld [vmem:[#allocation32_spill] sm:$0xff] }
  0x9f   :  { %v397_v27 = vmul.f32 0.5, %v1523_v45  ;;  %v693_v18 = vsel %vm601_vm0, %v583_v24, 0.0  ;;  %v459_v33 = vmul.f32 %v395_v11, %v1519_v57  ;;  %v957_v5 = vadd.f32 -0.5, %v267_v9 }
  0xa0   :  { %v585_v59 = vsel %vm2204_vm8, %v457_v48, %v955_v52  ;;  %v692_v42 = vadd.f32 %v691_v26, %v690_v53  ;;  %v270_v19 = vand.u32 2147483647, %v2607_v47  ;;  %vm2224_vm10 = vcmp.lt.f32.partialorder %v267_v9, 1.0 }
  0xa1   :  { %v398_v15 = vmul.f32 0.5, %v2607_v47  ;;  %v695_v60 = vsel %vm601_vm0, %v584_v58, 0.0  ;;  %v460_v39 = vmul.f32 %v396_v20, %v1521_v46  ;;  %v958_v21 = vadd.f32 -0.5, %v268_v3 }
  0xa2   :  { %v586_v57 = vsel %vm2214_vm9, %v458_v10, %v956_v31  ;;  %v694_v7 = vadd.f32 %v693_v18, %v692_v42  ;;  %v271_v16 = vand.u32 2147483647, %v2610_v49  ;;  %vm2234_vm11 = vcmp.lt.f32.partialorder %v268_v3, 1.0  ;;  %v2622_v3 = vld [vmem:[#allocation27_spill] sm:$0xff] }
  0xa3   :  { %v399_v34 = vmul.f32 0.5, %v2610_v49  ;;  %v697_v29 = vsel %vm601_vm0, %v585_v59, 0.0  ;;  %v461_v25 = vmul.f32 %v397_v27, %v1523_v45  ;;  %v959_v35 = vadd.f32 -0.5, %v269_v30 }
  0xa4   :  { %v587_v46 = vsel %vm2224_vm10, %v459_v33, %v957_v5  ;;  %v696_v0 = vadd.f32 %v695_v60, %v694_v7  ;;  %v272_v37 = vand.u32 2147483647, %v2613_v41  ;;  %vm2244_vm12 = vcmp.lt.f32.partialorder %v269_v30, 1.0 }
  0xa5   :  { %v400_v36 = vmul.f32 0.5, %v2613_v41  ;;  %v699_v61 = vsel %vm601_vm0, %v586_v57, 0.0  ;;  %v462_v8 = vmul.f32 %v398_v15, %v2607_v47  ;;  %v960_v38 = vadd.f32 -0.5, %v270_v19 }
  0xa6   :  { %v588_v45 = vsel %vm2234_vm11, %v460_v39, %v958_v21  ;;  %v698_v63 = vadd.f32 %v697_v29, %v696_v0  ;;  %v273_v28 = vand.u32 2147483647, %v2616_v12  ;;  %vm2254_vm13 = vcmp.lt.f32.partialorder %v270_v19, 1.0 }
  0xa7   :  { %v401_v1 = vmul.f32 0.5, %v2616_v12  ;;  %v701_v56 = vsel %vm601_vm0, %v587_v46, 0.0  ;;  %v463_v23 = vmul.f32 %v399_v34, %v2610_v49  ;;  %v961_v13 = vadd.f32 -0.5, %v271_v16 }
  0xa8   :  { %v589_v54 = vsel %vm2244_vm12, %v461_v25, %v959_v35  ;;  %v700_v4 = vadd.f32 %v699_v61, %v698_v63  ;;  %v274_v9 = vand.u32 2147483647, %v2619_v22  ;;  %vm2264_vm14 = vcmp.lt.f32.partialorder %v271_v16, 1.0 }
  0xa9   :  { %v402_v11 = vmul.f32 0.5, %v2619_v22  ;;  %v703_v32 = vsel %vm601_vm0, %v588_v45, 0.0  ;;  %v464_v48 = vmul.f32 %v400_v36, %v2613_v41  ;;  %v962_v52 = vadd.f32 -0.5, %v272_v37 }
  0xaa   :  { %v590_v24 = vsel %vm2254_vm13, %v462_v8, %v960_v38  ;;  %v702_v6 = vadd.f32 %v701_v56, %v700_v4  ;;  %v275_v40 = vand.u32 2147483647, %v2622_v3  ;;  %vm2274_vm15 = vcmp.lt.f32.partialorder %v272_v37, 1.0 }
  0xab   :  { %v403_v26 = vmul.f32 0.5, %v2622_v3  ;;  %v705_v10 = vsel %vm601_vm0, %v589_v54, 0.0  ;;  %v465_v31 = vmul.f32 %v401_v1, %v2616_v12  ;;  %v963_v58 = vadd.f32 -0.5, %v273_v28 }
  0xac   :  { %v591_v53 = vsel %vm2264_vm14, %v463_v23, %v961_v13  ;;  %v704_v30 = vadd.f32 %v703_v32, %v702_v6  ;;  %v276_v27 = vand.u32 2147483647, %v2625_v62  ;;  %vm2284_vm1 = vcmp.lt.f32.partialorder %v273_v28, 1.0 }
  0xad   :  { %v404_v33 = vmul.f32 0.5, %v2625_v62  ;;  %v707_v5 = vsel %vm601_vm0, %v590_v24, 0.0  ;;  %v466_v59 = vmul.f32 %v402_v11, %v2619_v22  ;;  %v964_v42 = vadd.f32 -0.5, %v274_v9 }
  0xae   :  { %v592_v47 = vsel %vm2274_vm15, %v464_v48, %v962_v52  ;;  %v706_v19 = vadd.f32 %v705_v10, %v704_v30  ;;  %v277_v15 = vand.u32 2147483647, %v2628_v44  ;;  %vm2294_vm2 = vcmp.lt.f32.partialorder %v274_v9, 1.0 }
  0xaf   :  { %v405_v39 = vmul.f32 0.5, %v2628_v44  ;;  %v709_v21 = vsel %vm601_vm0, %v591_v53, 0.0  ;;  %v467_v57 = vmul.f32 %v403_v26, %v2622_v3  ;;  %v965_v7 = vadd.f32 -0.5, %v275_v40 }
  0xb0   :  { %v593_v49 = vsel %vm2284_vm1, %v465_v31, %v963_v58  ;;  %v708_v16 = vadd.f32 %v707_v5, %v706_v19  ;;  %v278_v34 = vand.u32 2147483647, %v2631_v43  ;;  %vm2304_vm3 = vcmp.lt.f32.partialorder %v275_v40, 1.0 }
  0xb1   :  { %v406_v25 = vmul.f32 0.5, %v2631_v43  ;;  %v711_v35 = vsel %vm601_vm0, %v592_v47, 0.0  ;;  %v468_v46 = vmul.f32 %v404_v33, %v2625_v62  ;;  %v966_v0 = vadd.f32 -0.5, %v276_v27 }
  0xb2   :  { %v594_v41 = vsel %vm2294_vm2, %v466_v59, %v964_v42  ;;  %v710_v37 = vadd.f32 %v709_v21, %v708_v16  ;;  %v279_v36 = vand.u32 2147483647, %v2634_v50  ;;  %vm2314_vm4 = vcmp.lt.f32.partialorder %v276_v27, 1.0 }
  0xb3   :  { %v407_v8 = vmul.f32 0.5, %v2634_v50  ;;  %v713_v38 = vsel %vm601_vm0, %v593_v49, 0.0  ;;  %v469_v45 = vmul.f32 %v405_v39, %v2628_v44  ;;  %v967_v63 = vadd.f32 -0.5, %v277_v15 }
  0xb4   :  { %v595_v12 = vsel %vm2304_vm3, %v467_v57, %v965_v7  ;;  %v712_v28 = vadd.f32 %v711_v35, %v710_v37  ;;  %v280_v1 = vand.u32 2147483647, %v2637_v51  ;;  %vm2324_vm5 = vcmp.lt.f32.partialorder %v277_v15, 1.0 }
  0xb5   :  { %v408_v23 = vmul.f32 0.5, %v2637_v51  ;;  %v715_v13 = vsel %vm601_vm0, %v594_v41, 0.0  ;;  %v470_v54 = vmul.f32 %v406_v25, %v2631_v43  ;;  %v968_v4 = vadd.f32 -0.5, %v278_v34 }
  0xb6   :  { %v596_v22 = vsel %vm2314_vm4, %v468_v46, %v966_v0  ;;  %v714_v9 = vadd.f32 %v713_v38, %v712_v28  ;;  %vm2333_vm6 = vcmp.lt.f32.partialorder %v278_v34, 1.0  ;;  %v717_v11 = vsel %vm601_vm0, %v595_v12, 0.0 }
  0xb7   :  { %v471_v32 = vmul.f32 %v407_v8, %v2634_v50  ;;  %v969_v48 = vadd.f32 -0.5, %v279_v36  ;;  %v597_v52 = vsel %vm2324_vm5, %v469_v45, %v967_v63  ;;  %vm343_vm7 = vcmp.lt.f32.partialorder %v279_v36, 1.0  ;;  %v868_v63 = vld [vmem:[#allocation2] sm:$0x1] }
  0xb8   :  { %v716_v24 = vadd.f32 %v715_v13, %v714_v9  ;;  %v719_v6 = vsel %vm601_vm0, %v596_v22, 0.0  ;;  %v472_v3 = vmul.f32 %v408_v23, %v2637_v51  ;;  %v970_v40 = vadd.f32 -0.5, %v280_v1 }
  0xb9   :  { %v598_v20 = vsel %vm2333_vm6, %v470_v54, %v968_v4  ;;  %vm344_vm8 = vcmp.lt.f32.partialorder %v280_v1, 1.0  ;;  %v721_v10 = vsel %vm601_vm0, %v597_v52, 0.0  ;;  %v599_v31 = vsel %vm343_vm7, %v471_v32, %v969_v48 }
  0xba   :  { %v718_v26 = vadd.f32 %v717_v11, %v716_v24  ;;  %v723_v53 = vsel %vm601_vm0, %v598_v20, 0.0  ;;  %v600_v30 = vsel %vm344_vm8, %v472_v3, %v970_v40  ;;  %v725_v27 = vsel %vm601_vm0, %v599_v31, 0.0 }
  0xbb   :  { %v727_v33 = vsel %vm601_vm0, %v600_v30, 0.0  ;;  %vm799_vm9 = vcmask 1041408   ;;  %vm869_vm0 = vcmp.eq.s32.totalorder %v1864_v2, 0  ;;  %vm872_vm10 = vcmp.eq.s32.totalorder %v1864_v2, 1 }
  0xbc   :  { %v720_v58 = vadd.f32 %v719_v6, %v718_v26  ;;  %v800_v42 = vsel %vm799_vm9, %v2011_v17, 0.0  ;;  %vm876_vm11 = vcmp.eq.s32.totalorder %v1864_v2, 2  ;;  %v885_v51 = vsel %vm869_vm0, 0.001953125, %v1010_v14 }
  0xbd   :  { %v886_v1 = vsel %vm872_vm10, 0.003125, %v1010_v14  ;;  %v888_v13 = vsel %vm876_vm11, 6.25, %v1010_v14 }
  0xbe   :  { %v722_v62 = vadd.f32 %v721_v10, %v720_v58  ;;  %v887_v23 = vadd.f32 %v886_v1, %v885_v51 }
  0xc0   :  { %v724_v18 = vadd.f32 %v723_v53, %v722_v62  ;;  %v889_v54 = vadd.f32 %v888_v13, %v887_v23 }
  0xc2   :  { %v726_v5 = vadd.f32 %v725_v27, %v724_v18 }
  0xc4   :  { %v728_v59 = vadd.f32 %v727_v33, %v726_v5 }
  0xc6   :  { %729 = vadd.xlane.f32.xlu0 %v728_v59 }
  0xca   :  { %807 = vadd.xlane.f32.xlu0 %v800_v42 }
  0xed   :  { %v860_v47 = vpop.xlane.xlu1 %859 }
  0xee   :  { %v861_v19 = vrot.slane %v860_v47, 4 }
  0xf0   :  { %v862_v15 = vadd.f32 %v861_v19, %v860_v47 }
  0xf2   :  { %v863_v21 = vrot.slane %v862_v15, 2 }
  0xf4   :  { %v864_v34 = vadd.f32 %v863_v21, %v862_v15 }
  0xf6   :  { %v865_v0 = vrot.slane %v864_v34, 1 }
  0xf8   :  { %v866_v37 = vadd.f32 %v865_v0, %v864_v34 }
 0x14f   :  { %v730_v44 = vpop.xlane.xlu0 %729 }
 0x150   :  { %v731_v60 = vrot.slane %v730_v44, 4 }
 0x152   :  { %v732_v39 = vadd.f32 %v731_v60, %v730_v44 }
 0x153   :  { %v808_v57 = vpop.xlane.xlu0 %807 }
 0x154   :  { %v733_v7 = vrot.slane %v732_v39, 2  ;;  %v809_v49 = vrot.slane %v808_v57, 4 }
 0x156   :  { %v810_v16 = vadd.f32 %v809_v49, %v808_v57  ;;  %v734_v43 = vadd.f32 %v733_v7, %v732_v39 }
 0x158   :  { %v811_v29 = vrot.slane %v810_v16, 2  ;;  %v735_v25 = vrot.slane %v734_v43, 1 }
 0x15a   :  { %v812_v35 = vadd.f32 %v811_v29, %v810_v16  ;;  %v736_v46 = vadd.f32 %v735_v25, %v734_v43 }
 0x15c   :  { %972 = vpush %v736_v46  ;;  %v813_v17 = vrot.slane %v812_v35, 1 }
 0x15e   :  { %v814_v41 = vadd.f32 %v813_v17, %v812_v35 }
 0x160   :  { %974 = vpush %v814_v41 }
 0x161   :  { %978 = vpush %v866_v37 }
 0x18d   :  { %s973_s2 = spop %972 }
 0x18e   :  { %v870_v50 = vstv %s973_s2 }
 0x18f   :  { %v871_v61 = vsel %vm869_vm0, %v870_v50, 0.0 }
 0x191   :  { %s975_s3 = spop %974 }
 0x192   :  { %v873_v36 = vstv %s975_s3  ;;  %s979_s13 = spop %978 }
 0x193   :  { %v874_v8 = vsel %vm872_vm10, %v873_v36, 0.0  ;;  %v877_v38 = vstv %s979_s13 }
 0x194   :  { %v875_v45 = vadd.f32 %v874_v8, %v871_v61  ;;  %v878_v12 = vsel %vm876_vm11, %v877_v38, 0.0 }
 0x196   :  { %v879_v28 = vadd.f32 %v878_v12, %v875_v45 }
 0x198   :  { %v880_v56 = vadd.f32 %v879_v28, %v868_v63 }
 0x19a   :  { %881 = vst [vmem:[#allocation2] sm:$0x1] %v880_v56 }
 0x1a1   :  { %v890_v2 = vld [vmem:[#allocation2] sm:$0x1] }
 0x1a2   :  { %v891_v4 = vmul.f32 %v890_v2, %v889_v54 }
 0x1a4   :  { %892 = vst [vmem:[#allocation2] sm:$0x1] %v891_v4 }
 0x1a5   :  { %999 = shalt.err (!%p996_p4)
}
 0x1a6   :  { %902 = dma.vmem_to_hbm [thread:$0]  %s900_s15, 16, %s2363_s4, [#allocation3]  }
 0x1a7   :  { %1008 = dma.done.wait [#allocation3], 16  }
 0x1a8   :  { %1009 = vsyncadd [#allocation3], 4294967280 }
 0x1a9   :  { %906 = vsyncpa [#allocation3], 1 }

</bundles_post_ra>
